<compile_context>
chip_gen: v6e
topology: v6e:2x2x1
jax: 0.10.0
libtpu: 0.0.40
codegen_flags: <defaults>
</compile_context>

<pallas_src>
import math
import jax
import jax.numpy as jnp
from jax.experimental import pallas as pl
from jax.experimental.pallas import tpu as pltpu

D_MODEL = 32
HEADS = 4
D_FF = 64
NEG_INF = -1e18
EPS = 1e-6


# ---------------------------------------------------------------------------
# Parameter packing: 26 raw arrays -> 8 packed arrays.
# Weight matrices are cast to bf16 (MXU-native on v5e/v6e/v7x); biases / LN params
# stay f32. 1/sqrt(d_head) is folded into the Q projection here; the raw params
# keep the PyTorch layout.
# ---------------------------------------------------------------------------
def pack_params(params, heads=HEADS):
    (ln1_g, ln1_b,
     sa_wq, sa_bq, sa_wk, sa_bk, sa_wv, sa_bv, sa_wo, sa_bo,
     ln2_g, ln2_b,
     ca_wq, ca_bq, ca_wk, ca_bk, ca_wv, ca_bv, ca_wo, ca_bo,
     fln_g, fln_b, ffn_w1, ffn_b1, ffn_w2, ffn_b2) = params
    d_model = sa_wq.shape[0]
    d_ff = ffn_w1.shape[1]
    d_head = d_model // heads
    scale = 1.0 / math.sqrt(d_head)

    w_qkv = jnp.stack([
        jnp.concatenate([sa_wq * scale, sa_wk, sa_wv], axis=1),
        jnp.concatenate([ca_wq * scale, ca_wk, ca_wv], axis=1)],
        axis=0).astype(jnp.bfloat16)                                       # (2, D, 3D) bf16
    b_qkv = jnp.stack([
        jnp.concatenate([sa_bq.reshape(-1) * scale, sa_bk.reshape(-1), sa_bv.reshape(-1)]),
        jnp.concatenate([ca_bq.reshape(-1) * scale, ca_bk.reshape(-1), ca_bv.reshape(-1)])],
        axis=0).astype(jnp.float32)                                        # (2, 3D) f32
    w_o = jnp.stack([sa_wo, ca_wo], axis=0).astype(jnp.bfloat16)           # (2, D, D) bf16
    b_o = jnp.stack([sa_bo.reshape(-1), ca_bo.reshape(-1)], axis=0).astype(jnp.float32)
    ln = jnp.stack([ln1_g.reshape(-1), ln1_b.reshape(-1),
                    ln2_g.reshape(-1), ln2_b.reshape(-1),
                    fln_g.reshape(-1), fln_b.reshape(-1)], axis=0).astype(jnp.float32)
    width = max(d_ff, d_model)
    b_ff = jnp.stack([jnp.pad(ffn_b1.reshape(-1), (0, width - d_ff)),
                      jnp.pad(ffn_b2.reshape(-1), (0, width - d_model))],
                     axis=0).astype(jnp.float32)                           # (2, width)
    return (w_qkv, b_qkv, w_o, b_o, ln,
            ffn_w1.astype(jnp.bfloat16), b_ff, ffn_w2.astype(jnp.bfloat16))


# ---------------------------------------------------------------------------
# Kernel factory (constants closed over -> static shapes inside the kernel).
# ---------------------------------------------------------------------------
def _make_kernel(bb, t_len, s_len, d_model, heads, d_ff):
    d_head = d_model // heads

    def layer_norm(x, g, b):                      # f32 throughout
        mu = jnp.mean(x, axis=-1, keepdims=True)
        var = jnp.mean(jnp.square(x - mu), axis=-1, keepdims=True)
        return (x - mu) * jax.lax.rsqrt(var + EPS) * g + b

    def mha(q_in16, kv_in16, bias, w_qkv, b_qkv, w_o, b_o, fused):
        # bf16 MXU operands, f32 accumulation.
        if fused:                                 # self-attn: one fused QKV matmul
            qkv = jnp.dot(q_in16, w_qkv, preferred_element_type=jnp.float32) + b_qkv
            q = qkv[:, :d_model]
            k = qkv[:, d_model:2 * d_model]
            v = qkv[:, 2 * d_model:]
        else:                                     # cross-attn: Q from query, fused K|V from memory
            q = (jnp.dot(q_in16, w_qkv[:, :d_model],
                         preferred_element_type=jnp.float32) + b_qkv[:, :d_model])
            kv = (jnp.dot(kv_in16, w_qkv[:, d_model:],
                          preferred_element_type=jnp.float32) + b_qkv[:, d_model:])
            k = kv[:, :d_model]
            v = kv[:, d_model:]

        q16 = q.astype(jnp.bfloat16)
        kt16 = k.T.astype(jnp.bfloat16)           # single (Rk,D)->(D,Rk) transpose per attention
        v16 = v.astype(jnp.bfloat16)

        ctx_parts = []
        top_attn = None
        for h in range(heads):                    # 1/sqrt(d_head) already folded into Wq/bq
            sl = slice(h * d_head, (h + 1) * d_head)
            s = jnp.dot(q16[:, sl], kt16[sl, :],
                        preferred_element_type=jnp.float32) + bias     # additive mask bias
            s = s - jnp.max(s, axis=-1, keepdims=True)
            e = jnp.exp(s)
            p = e * pl.reciprocal(jnp.sum(e, axis=-1, keepdims=True), approx=True)
            if h == 0:
                top_attn = p                      # OpenNMT returns head-0 attention
            ctx_parts.append(jnp.dot(p.astype(jnp.bfloat16), v16[:, sl],
                                     preferred_element_type=jnp.float32))
        ctx16 = jnp.concatenate(ctx_parts, axis=-1).astype(jnp.bfloat16)   # (Rq, D)
        out = jnp.dot(ctx16, w_o, preferred_element_type=jnp.float32) + b_o
        return out, top_attn

    def kernel(x_ref, mem_ref, self_struct_ref, cross_struct_ref,
               tgt_bias_ref, src_bias_ref,
               w_qkv_ref, b_qkv_ref, w_o_ref, b_o_ref, ln_ref,
               w_ff1_ref, b_ff_ref, w_ff2_ref,
               out_ref, attn_ref):
        x = x_ref[0].astype(jnp.float32)          # (bb*T, D) f32 for LayerNorm/residual math
        mem16 = mem_ref[0]                        # (bb*S, D) bf16 (memory is not layer-normed)

        # Additive mask biases, built once per step (hoisted out of all head loops):
        # constant structural part (causal k=1 + block-diag batch separation, bf16)
        # + per-step key-side pad-bias vectors. Same semantics as
        # torch.gt(tgt_pad_mask + subsequent_mask, 0) -> masked_fill(-1e18).
        self_bias = self_struct_ref[...].astype(jnp.float32) + tgt_bias_ref[0]   # (Rq, Rq)
        cross_bias = cross_struct_ref[...].astype(jnp.float32) + src_bias_ref[0]  # (Rq, Rk)

        ln = ln_ref[...]                          # (6, D) f32

        # --- self-attention block ---
        input_norm = layer_norm(x, ln[0:1], ln[1:2])
        sa_out, _ = mha(input_norm.astype(jnp.bfloat16), None, self_bias,
                        w_qkv_ref[0], b_qkv_ref[0:1, :],
                        w_o_ref[0], b_o_ref[0:1, :], fused=True)
        # TODO(synk): nn.Dropout is identity here (inference semantics, p irrelevant).
        query = sa_out + x

        # --- context (cross) attention block ---
        query_norm = layer_norm(query, ln[2:3], ln[3:4])
        ca_out, top_attn = mha(query_norm.astype(jnp.bfloat16), mem16, cross_bias,
                               w_qkv_ref[1], b_qkv_ref[1:2, :],
                               w_o_ref[1], b_o_ref[1:2, :], fused=False)

        # --- position-wise feed-forward (own LayerNorm + residual) ---
        ffn_in = ca_out + query
        h = layer_norm(ffn_in, ln[4:5], ln[5:6]).astype(jnp.bfloat16)
        h = jnp.maximum(
            jnp.dot(h, w_ff1_ref[...], preferred_element_type=jnp.float32)
            + b_ff_ref[0:1, :d_ff], 0.0)
        out = (jnp.dot(h.astype(jnp.bfloat16), w_ff2_ref[...],
                       preferred_element_type=jnp.float32)
               + b_ff_ref[1:2, :d_model] + ffn_in)

        out_ref[0] = out.astype(out_ref.dtype)
        # Write ONLY the per-batch diagonal (T,S) blocks of head-0 cross attention
        # (cross-batch columns are structurally masked -> exactly the per-batch softmax).
        for bi in range(bb):
            attn_ref[0, bi, :, :] = top_attn[bi * t_len:(bi + 1) * t_len,
                                             bi * s_len:(bi + 1) * s_len].astype(attn_ref.dtype)
        # TODO(synk): with toy d_model/S (<128) the out/attn stores are lane-masked;
        # for production widths (>=128) they are lane-dense.

    return kernel


# ---------------------------------------------------------------------------
# Wrapper
# ---------------------------------------------------------------------------
def transformer_decoder_layer(inputs, memory_bank, src_pad_mask, tgt_pad_mask,
                              params, heads=HEADS, rows_per_step=128,
                              min_parallel_steps=2):
    """inputs (B,T,D), memory_bank (B,S,D), src_pad_mask (B,1,S), tgt_pad_mask (B,1,T).
    Returns (output (B,T,D) f32, attn (B,T,S) f32)."""
    B, T, D = inputs.shape
    S = memory_bank.shape[1]
    packed = pack_params(params, heads)
    d_ff = packed[5].shape[1]

    # Batch-collapse: BB batch elements per grid step so projections/FFN see a
    # full-sublane M dimension. Cap BB so NB >= min_parallel_steps (keeps both v7x
    # TensorCores busy via the "parallel" axis). rows_per_step=128 fills the v5e MXU;
    # raise to 256 on v6e/v7x now that the attn write is diagonal-only.
    BB = max(1, min(B, rows_per_step // max(T, 1), pl.cdiv(B, min_parallel_steps)))
    NB = pl.cdiv(B, BB)
    B_pad = NB * BB
    if B_pad != B:
        pad = B_pad - B
        inputs = jnp.pad(inputs, ((0, pad), (0, 0), (0, 0)))
        memory_bank = jnp.pad(memory_bank, ((0, pad), (0, 0), (0, 0)))
        # padded batches left unmasked so softmax stays finite; results sliced off below
        src_pad_mask = jnp.pad(src_pad_mask, ((0, pad), (0, 0), (0, 0)))
        tgt_pad_mask = jnp.pad(tgt_pad_mask, ((0, pad), (0, 0), (0, 0)))

    Rq, Rk = BB * T, BB * S
    x = inputs.astype(jnp.bfloat16).reshape(NB, Rq, D)            # bf16 HBM activations
    mem = memory_bank.astype(jnp.bfloat16).reshape(NB, Rk, D)
    # Per-step key-side pad biases (tiny, f32): 0 where visible, -1e18 where padded.
    tgt_bias = jnp.where(tgt_pad_mask > 0, NEG_INF, 0.0).astype(jnp.float32).reshape(NB, 1, Rq)
    src_bias = jnp.where(src_pad_mask > 0, NEG_INF, 0.0).astype(jnp.float32).reshape(NB, 1, Rk)

    # Constant structural bias (causal k=1 + block-diag batch separation), bf16.
    # Constant index_map -> DMA'd into VMEM once, not per grid step.
    q_ids = jnp.arange(Rq, dtype=jnp.int32)
    k_ids = jnp.arange(Rk, dtype=jnp.int32)
    qb, qt = q_ids // T, q_ids % T
    kb = k_ids // S
    self_struct = jnp.where((qb[:, None] != qb[None, :]) | (qt[None, :] > qt[:, None]),
                            NEG_INF, 0.0).astype(jnp.bfloat16)                 # (Rq, Rq)
    cross_struct = jnp.where(qb[:, None] != kb[None, :],
                             NEG_INF, 0.0).astype(jnp.bfloat16)                # (Rq, Rk)

    kernel = _make_kernel(BB, T, S, D, heads, d_ff)

    in_specs = [
        pl.BlockSpec((1, Rq, D), lambda b: (b, 0, 0)),      # x (flattened batch block, bf16)
        pl.BlockSpec((1, Rk, D), lambda b: (b, 0, 0)),      # memory (flattened, bf16)
        pl.BlockSpec((Rq, Rq), lambda b: (0, 0)),           # structural self bias (constant)
        pl.BlockSpec((Rq, Rk), lambda b: (0, 0)),           # structural cross bias (constant)
        pl.BlockSpec((1, 1, Rq), lambda b: (b, 0, 0)),      # tgt pad bias (key-side)
        pl.BlockSpec((1, 1, Rk), lambda b: (b, 0, 0)),      # src pad bias (key-side)
    ] + [pl.BlockSpec(p.shape, lambda b, n=p.ndim: (0,) * n) for p in packed]

    out_shape = [
        jax.ShapeDtypeStruct((NB, Rq, D), jnp.float32),
        jax.ShapeDtypeStruct((NB, BB, T, S), jnp.float32),  # diagonal attn blocks only
    ]
    out_specs = [
        pl.BlockSpec((1, Rq, D), lambda b: (b, 0, 0)),
        pl.BlockSpec((1, BB, T, S), lambda b: (b, 0, 0, 0)),
    ]

    # Explicit VMEM budget (matters on v7x: 64 MiB physical / 32 MiB scoped default).
    block_bytes = (Rq * D * 2 + Rk * D * 2            # x, mem (bf16)
                   + Rq * Rq * 2 + Rq * Rk * 2        # structural biases (bf16)
                   + (Rq + Rk) * 4                    # pad biases
                   + sum(p.size * p.dtype.itemsize for p in packed)
                   + Rq * D * 4 + BB * T * S * 4)     # outputs
    scratch_bytes = 2 * heads * Rq * max(Rq, Rk) * 4  # unrolled-head score/prob temporaries
    vmem_limit = int(min(max(2 * block_bytes + scratch_bytes, 32 * 2**20), 48 * 2**20))

    fn = pl.pallas_call(
        kernel,
        out_shape=out_shape,
        grid=(NB,),
        in_specs=in_specs,
        out_specs=out_specs,
        compiler_params=pltpu.CompilerParams(
            # NB >= 2 lets the two v7x TensorCores shard the batch-block axis.
            dimension_semantics=("parallel",),
            vmem_limit_bytes=vmem_limit),
    )
    out_flat, attn_diag = fn(x, mem, self_struct, cross_struct,
                             tgt_bias, src_bias, *packed)

    output = out_flat.reshape(B_pad, T, D)[:B]
    attn = attn_diag.reshape(B_pad, T, S)[:B]       # free reshape — no host-side re-gather
    return output, attn


# ---------------------------------------------------------------------------
# Deterministic synthetic init (same 26-array layout as the torch module).
# ---------------------------------------------------------------------------
def init_params(key, d_model=D_MODEL, d_ff=D_FF):
    ks = iter(jax.random.split(key, 32))

    def lin(din, dout):
        w = 0.05 * jax.random.normal(next(ks), (din, dout), jnp.float32)
        b = 0.01 * jax.random.normal(next(ks), (1, dout), jnp.float32)
        return w, b

    ones = jnp.ones((1, d_model), jnp.float32)
    zeros = jnp.zeros((1, d_model), jnp.float32)

    sa_wq, sa_bq = lin(d_model, d_model)
    sa_wk, sa_bk = lin(d_model, d_model)
    sa_wv, sa_bv = lin(d_model, d_model)
    sa_wo, sa_bo = lin(d_model, d_model)
    ca_wq, ca_bq = lin(d_model, d_model)
    ca_wk, ca_bk = lin(d_model, d_model)
    ca_wv, ca_bv = lin(d_model, d_model)
    ca_wo, ca_bo = lin(d_model, d_model)
    ffn_w1, ffn_b1 = lin(d_model, d_ff)
    ffn_w2, ffn_b2 = lin(d_ff, d_model)

    return (
        ones, zeros,
        sa_wq, sa_bq, sa_wk, sa_bk, sa_wv, sa_bv, sa_wo, sa_bo,
        ones, zeros,
        ca_wq, ca_bq, ca_wk, ca_bk, ca_wv, ca_bv, ca_wo, ca_bo,
        ones, zeros,
        ffn_w1, ffn_b1, ffn_w2, ffn_b2,
    )


# ---------------------------------------------------------------------------
# Pure-JAX reference (mirrors the torch module) for a correctness check.
# ---------------------------------------------------------------------------
def _reference(inputs, memory_bank, src_pad_mask, tgt_pad_mask, params, heads=HEADS):
    (ln1_g, ln1_b,
     sa_wq, sa_bq, sa_wk, sa_bk, sa_wv, sa_bv, sa_wo, sa_bo,
     ln2_g, ln2_b,
     ca_wq, ca_bq, ca_wk, ca_bk, ca_wv, ca_bv, ca_wo, ca_bo,
     fln_g, fln_b, ffn_w1, ffn_b1, ffn_w2, ffn_b2) = params
    B, T, D = inputs.shape
    dh = D // heads

    def ln(x, g, b):
        mu = jnp.mean(x, -1, keepdims=True)
        var = jnp.mean((x - mu) ** 2, -1, keepdims=True)
        return (x - mu) * jax.lax.rsqrt(var + EPS) * g + b

    def mha(key, value, query, mask, wq, bq, wk, bk, wv, bv, wo, bo):
        Bq, Tq, _ = query.shape

        def split(x):
            return x.reshape(Bq, -1, heads, dh).transpose(0, 2, 1, 3)

        q = split(query @ wq + bq) / math.sqrt(dh)
        k = split(key @ wk + bk)
        v = split(value @ wv + bv)
        s = jnp.einsum('bhqd,bhkd->bhqk', q, k)
        s = jnp.where(mask[:, None, :, :] > 0, NEG_INF, s)
        p = jax.nn.softmax(s, axis=-1)
        ctx = jnp.einsum('bhqk,bhkd->bhqd', p, v).transpose(0, 2, 1, 3).reshape(Bq, Tq, D)
        return ctx @ wo + bo, p[:, 0]

    causal = jnp.triu(jnp.ones((1, T, T), jnp.int32), k=1)
    dec_mask = tgt_pad_mask.astype(jnp.int32) + causal
    input_norm = ln(inputs, ln1_g, ln1_b)
    query, _ = mha(input_norm, input_norm, input_norm, dec_mask,
                   sa_wq, sa_bq, sa_wk, sa_bk, sa_wv, sa_bv, sa_wo, sa_bo)
    query = query + inputs
    query_norm = ln(query, ln2_g, ln2_b)
    mid, attn = mha(memory_bank, memory_bank, query_norm, src_pad_mask.astype(jnp.int32),
                    ca_wq, ca_bq, ca_wk, ca_bk, ca_wv, ca_bv, ca_wo, ca_bo)
    ffn_in = mid + query
    h = jnp.maximum(ln(ffn_in, fln_g, fln_b) @ ffn_w1 + ffn_b1, 0.0)
    out = h @ ffn_w2 + ffn_b2 + ffn_in
    return out, attn


if __name__ == "__main__":
    key = jax.random.PRNGKey(0)
    B, T, S = 2, 8, 10
    k_in, k_mem, k_par = jax.random.split(key, 3)

    inputs = jax.random.normal(k_in, (B, T, D_MODEL), jnp.float32)        # [batch, tgt_len, d_model]
    memory_bank = jax.random.normal(k_mem, (B, S, D_MODEL), jnp.float32)  # [batch, src_len, d_model]
    src_pad_mask = jnp.zeros((B, 1, S), jnp.int32).at[1, 0, S - 2:].set(1)  # pad last 2 src tokens of b=1
    tgt_pad_mask = jnp.zeros((B, 1, T), jnp.int32).at[1, 0, T - 1:].set(1)  # pad last tgt token of b=1

    params = init_params(k_par)

    output, attn = transformer_decoder_layer(
        inputs, memory_bank, src_pad_mask, tgt_pad_mask, params)
    jax.block_until_ready((output, attn))

    assert output.shape == (B, T, D_MODEL)
    assert attn.shape == (B, T, S)
    assert bool(jnp.all(jnp.isfinite(output))) and bool(jnp.all(jnp.isfinite(attn)))

    # Reference evaluated on the same bf16-rounded activations/weights the kernel
    # consumes (the kernel stores activations/weights in bf16 in HBM); remaining
    # differences come from bf16 MXU operands and the approx reciprocal.
    def rb16(a):
        return a.astype(jnp.bfloat16).astype(jnp.float32)

    params16 = tuple(rb16(p) for p in params)
    ref_out, ref_attn = _reference(rb16(inputs), rb16(memory_bank),
                                   src_pad_mask, tgt_pad_mask, params16)
    out_err = float(jnp.max(jnp.abs(output - ref_out)))
    attn_err = float(jnp.max(jnp.abs(attn - ref_attn)))
    assert out_err < 3e-2, out_err
    assert attn_err < 2e-2, attn_err

    print("KERNEL_OK")
</pallas_src>

<mosaic_0001>
module attributes {stable_mosaic.version = 11 : i64} {
  func.func @kernel(%arg0: i32, %arg1: memref<1x8x32xbf16, #tpu.memory_space<vmem>>, %arg2: memref<1x10x32xbf16, #tpu.memory_space<vmem>>, %arg3: memref<8x8xbf16, #tpu.memory_space<vmem>>, %arg4: memref<8x10xbf16, #tpu.memory_space<vmem>>, %arg5: memref<1x1x8xf32, #tpu.memory_space<vmem>>, %arg6: memref<1x1x10xf32, #tpu.memory_space<vmem>>, %arg7: memref<2x32x96xbf16, #tpu.memory_space<vmem>>, %arg8: memref<2x96xf32, #tpu.memory_space<vmem>>, %arg9: memref<2x32x32xbf16, #tpu.memory_space<vmem>>, %arg10: memref<2x32xf32, #tpu.memory_space<vmem>>, %arg11: memref<6x32xf32, #tpu.memory_space<vmem>>, %arg12: memref<32x64xbf16, #tpu.memory_space<vmem>>, %arg13: memref<2x64xf32, #tpu.memory_space<vmem>>, %arg14: memref<64x32xbf16, #tpu.memory_space<vmem>>, %arg15: memref<1x8x32xf32, #tpu.memory_space<vmem>>, %arg16: memref<1x1x8x10xf32, #tpu.memory_space<vmem>>) attributes {dimension_semantics = [#tpu.dimension_semantics<parallel>], iteration_bounds = array<i64: 2>, scalar_prefetch = 0 : i64, scratch_operands = 0 : i64, tpu.core_type = #tpu.core_type<tc>, window_params = [{transform_indices = @transform_0, window_bounds = array<i64: 1, 8, 32>}, {transform_indices = @transform_1, window_bounds = array<i64: 1, 10, 32>}, {pipeline_mode = #tpu.pipeline_mode<synchronous>, transform_indices = @transform_2, window_bounds = array<i64: 8, 8>}, {pipeline_mode = #tpu.pipeline_mode<synchronous>, transform_indices = @transform_3, window_bounds = array<i64: 8, 10>}, {transform_indices = @transform_4, window_bounds = array<i64: 1, 1, 8>}, {transform_indices = @transform_5, window_bounds = array<i64: 1, 1, 10>}, {pipeline_mode = #tpu.pipeline_mode<synchronous>, transform_indices = @transform_6, window_bounds = array<i64: 2, 32, 96>}, {pipeline_mode = #tpu.pipeline_mode<synchronous>, transform_indices = @transform_7, window_bounds = array<i64: 2, 96>}, {pipeline_mode = #tpu.pipeline_mode<synchronous>, transform_indices = @transform_8, window_bounds = array<i64: 2, 32, 32>}, {pipeline_mode = #tpu.pipeline_mode<synchronous>, transform_indices = @transform_9, window_bounds = array<i64: 2, 32>}, {pipeline_mode = #tpu.pipeline_mode<synchronous>, transform_indices = @transform_10, window_bounds = array<i64: 6, 32>}, {pipeline_mode = #tpu.pipeline_mode<synchronous>, transform_indices = @transform_11, window_bounds = array<i64: 32, 64>}, {pipeline_mode = #tpu.pipeline_mode<synchronous>, transform_indices = @transform_12, window_bounds = array<i64: 2, 64>}, {pipeline_mode = #tpu.pipeline_mode<synchronous>, transform_indices = @transform_13, window_bounds = array<i64: 64, 32>}, {transform_indices = @transform_14, window_bounds = array<i64: 1, 8, 32>}, {transform_indices = @transform_15, window_bounds = array<i64: 1, 1, 8, 10>}]} {
    %c0 = arith.constant 0 : index
    %c0_0 = arith.constant 0 : index
    %c0_1 = arith.constant 0 : index
    %0 = vector.load %arg1[%c0, %c0_0, %c0_1] : memref<1x8x32xbf16, #tpu.memory_space<vmem>>, vector<1x8x32xbf16>
    %1 = vector.shape_cast %0 : vector<1x8x32xbf16> to vector<8x32xbf16>
    %2 = arith.extf %1 : vector<8x32xbf16> to vector<8x32xf32>
    %c0_2 = arith.constant 0 : index
    %c0_3 = arith.constant 0 : index
    %c0_4 = arith.constant 0 : index
    %3 = vector.load %arg2[%c0_2, %c0_3, %c0_4] : memref<1x10x32xbf16, #tpu.memory_space<vmem>>, vector<1x10x32xbf16>
    %4 = vector.shape_cast %3 : vector<1x10x32xbf16> to vector<10x32xbf16>
    %c0_5 = arith.constant 0 : index
    %c0_6 = arith.constant 0 : index
    %5 = vector.load %arg3[%c0_5, %c0_6] : memref<8x8xbf16, #tpu.memory_space<vmem>>, vector<8x8xbf16>
    %6 = arith.extf %5 : vector<8x8xbf16> to vector<8x8xf32>
    %c0_7 = arith.constant 0 : index
    %c0_8 = arith.constant 0 : index
    %c0_9 = arith.constant 0 : index
    %7 = vector.load %arg5[%c0_7, %c0_8, %c0_9] : memref<1x1x8xf32, #tpu.memory_space<vmem>>, vector<1x1x8xf32>
    %8 = vector.shape_cast %7 : vector<1x1x8xf32> to vector<1x8xf32>
    %9 = vector.broadcast %8 : vector<1x8xf32> to vector<8x8xf32>
    %10 = arith.addf %6, %9 : vector<8x8xf32>
    %c0_10 = arith.constant 0 : index
    %c0_11 = arith.constant 0 : index
    %11 = vector.load %arg4[%c0_10, %c0_11] : memref<8x10xbf16, #tpu.memory_space<vmem>>, vector<8x10xbf16>
    %12 = arith.extf %11 : vector<8x10xbf16> to vector<8x10xf32>
    %c0_12 = arith.constant 0 : index
    %c0_13 = arith.constant 0 : index
    %c0_14 = arith.constant 0 : index
    %13 = vector.load %arg6[%c0_12, %c0_13, %c0_14] : memref<1x1x10xf32, #tpu.memory_space<vmem>>, vector<1x1x10xf32>
    %14 = vector.shape_cast %13 : vector<1x1x10xf32> to vector<1x10xf32>
    %15 = vector.broadcast %14 : vector<1x10xf32> to vector<8x10xf32>
    %16 = arith.addf %12, %15 : vector<8x10xf32>
    %c0_15 = arith.constant 0 : index
    %c0_16 = arith.constant 0 : index
    %17 = vector.load %arg11[%c0_15, %c0_16] : memref<6x32xf32, #tpu.memory_space<vmem>>, vector<6x32xf32>
    %18 = vector.extract_strided_slice %17 {offsets = [0, 0], sizes = [1, 32], strides = [1, 1]} : vector<6x32xf32> to vector<1x32xf32>
    %19 = vector.extract_strided_slice %17 {offsets = [1, 0], sizes = [1, 32], strides = [1, 1]} : vector<6x32xf32> to vector<1x32xf32>
    %cst = arith.constant dense<0.000000e+00> : vector<8xf32>
    %20 = vector.multi_reduction <add>, %2, %cst [1] : vector<8x32xf32> to vector<8xf32>
    %21 = vector.shape_cast %20 : vector<8xf32> to vector<8x1xf32>
    %cst_17 = arith.constant 3.200000e+01 : f32
    %22 = vector.broadcast %cst_17 : f32 to vector<8x1xf32>
    %23 = arith.divf %21, %22 : vector<8x1xf32>
    %24 = vector.broadcast %23 : vector<8x1xf32> to vector<8x32xf32>
    %25 = arith.subf %2, %24 : vector<8x32xf32>
    %26 = arith.mulf %25, %25 : vector<8x32xf32>
    %cst_18 = arith.constant dense<0.000000e+00> : vector<8xf32>
    %27 = vector.multi_reduction <add>, %26, %cst_18 [1] : vector<8x32xf32> to vector<8xf32>
    %28 = vector.shape_cast %27 : vector<8xf32> to vector<8x1xf32>
    %cst_19 = arith.constant 3.200000e+01 : f32
    %29 = vector.broadcast %cst_19 : f32 to vector<8x1xf32>
    %30 = arith.divf %28, %29 : vector<8x1xf32>
    %31 = vector.broadcast %23 : vector<8x1xf32> to vector<8x32xf32>
    %32 = arith.subf %2, %31 : vector<8x32xf32>
    %cst_20 = arith.constant 9.99999997E-7 : f32
    %33 = vector.broadcast %cst_20 : f32 to vector<8x1xf32>
    %34 = arith.addf %30, %33 : vector<8x1xf32>
    %35 = math.rsqrt %34 : vector<8x1xf32>
    %36 = vector.broadcast %35 : vector<8x1xf32> to vector<8x32xf32>
    %37 = arith.mulf %32, %36 : vector<8x32xf32>
    %38 = vector.broadcast %18 : vector<1x32xf32> to vector<8x32xf32>
    %39 = arith.mulf %37, %38 : vector<8x32xf32>
    %40 = vector.broadcast %19 : vector<1x32xf32> to vector<8x32xf32>
    %41 = arith.addf %39, %40 : vector<8x32xf32>
    %42 = arith.truncf %41 : vector<8x32xf32> to vector<8x32xbf16>
    %c0_21 = arith.constant 0 : index
    %c0_22 = arith.constant 0 : index
    %c0_23 = arith.constant 0 : index
    %43 = vector.load %arg7[%c0_21, %c0_22, %c0_23] : memref<2x32x96xbf16, #tpu.memory_space<vmem>>, vector<1x32x96xbf16>
    %44 = vector.shape_cast %43 : vector<1x32x96xbf16> to vector<32x96xbf16>
    %c0_24 = arith.constant 0 : index
    %c0_25 = arith.constant 0 : index
    %45 = vector.load %arg8[%c0_24, %c0_25] : memref<2x96xf32, #tpu.memory_space<vmem>>, vector<1x96xf32>
    %c0_26 = arith.constant 0 : index
    %c0_27 = arith.constant 0 : index
    %c0_28 = arith.constant 0 : index
    %46 = vector.load %arg9[%c0_26, %c0_27, %c0_28] : memref<2x32x32xbf16, #tpu.memory_space<vmem>>, vector<1x32x32xbf16>
    %47 = vector.shape_cast %46 : vector<1x32x32xbf16> to vector<32x32xbf16>
    %c0_29 = arith.constant 0 : index
    %c0_30 = arith.constant 0 : index
    %48 = vector.load %arg10[%c0_29, %c0_30] : memref<2x32xf32, #tpu.memory_space<vmem>>, vector<1x32xf32>
    %cst_31 = arith.constant dense<0.000000e+00> : vector<8x96xf32>
    %49 = tpu.matmul %42, %44, %cst_31 {dimension_numbers = #tpu.dot_dimension_numbers<[1], [0], [0], [1], [0, 0, 1, 1], [], []>} : vector<8x32xbf16>, vector<32x96xbf16>, vector<8x96xf32> -> vector<8x96xf32>
    %50 = vector.broadcast %45 : vector<1x96xf32> to vector<8x96xf32>
    %51 = arith.addf %49, %50 : vector<8x96xf32>
    %52 = vector.extract_strided_slice %51 {offsets = [0, 0], sizes = [8, 32], strides = [1, 1]} : vector<8x96xf32> to vector<8x32xf32>
    %53 = vector.extract_strided_slice %51 {offsets = [0, 32], sizes = [8, 32], strides = [1, 1]} : vector<8x96xf32> to vector<8x32xf32>
    %54 = vector.extract_strided_slice %51 {offsets = [0, 64], sizes = [8, 32], strides = [1, 1]} : vector<8x96xf32> to vector<8x32xf32>
    %55 = arith.truncf %52 : vector<8x32xf32> to vector<8x32xbf16>
    %56 = tpu.transpose %53, [1, 0] : vector<8x32xf32> -> vector<32x8xf32>
    %57 = arith.truncf %56 : vector<32x8xf32> to vector<32x8xbf16>
    %58 = arith.truncf %54 : vector<8x32xf32> to vector<8x32xbf16>
    %59 = vector.extract_strided_slice %55 {offsets = [0, 0], sizes = [8, 8], strides = [1, 1]} : vector<8x32xbf16> to vector<8x8xbf16>
    %60 = vector.extract_strided_slice %57 {offsets = [0, 0], sizes = [8, 8], strides = [1, 1]} : vector<32x8xbf16> to vector<8x8xbf16>
    %cst_32 = arith.constant dense<0.000000e+00> : vector<8x8xf32>
    %61 = tpu.matmul %59, %60, %cst_32 {dimension_numbers = #tpu.dot_dimension_numbers<[1], [0], [0], [1], [0, 0, 1, 1], [], []>} : vector<8x8xbf16>, vector<8x8xbf16>, vector<8x8xf32> -> vector<8x8xf32>
    %62 = arith.addf %61, %10 : vector<8x8xf32>
    %cst_33 = arith.constant dense<0xFF800000> : vector<8xf32>
    %63 = vector.multi_reduction <maximumf>, %62, %cst_33 [1] : vector<8x8xf32> to vector<8xf32>
    %64 = vector.shape_cast %63 : vector<8xf32> to vector<8x1xf32>
    %65 = vector.broadcast %64 : vector<8x1xf32> to vector<8x8xf32>
    %66 = arith.subf %62, %65 : vector<8x8xf32>
    %67 = math.exp %66 : vector<8x8xf32>
    %cst_34 = arith.constant dense<0.000000e+00> : vector<8xf32>
    %68 = vector.multi_reduction <add>, %67, %cst_34 [1] : vector<8x8xf32> to vector<8xf32>
    %69 = vector.shape_cast %68 : vector<8xf32> to vector<8x1xf32>
    %70 = tpu.reciprocal %69 {approx = true} : vector<8x1xf32> -> vector<8x1xf32>
    %71 = vector.broadcast %70 : vector<8x1xf32> to vector<8x8xf32>
    %72 = arith.mulf %67, %71 : vector<8x8xf32>
    %73 = arith.truncf %72 : vector<8x8xf32> to vector<8x8xbf16>
    %74 = vector.extract_strided_slice %58 {offsets = [0, 0], sizes = [8, 8], strides = [1, 1]} : vector<8x32xbf16> to vector<8x8xbf16>
    %cst_35 = arith.constant dense<0.000000e+00> : vector<8x8xf32>
    %75 = tpu.matmul %73, %74, %cst_35 {dimension_numbers = #tpu.dot_dimension_numbers<[1], [0], [0], [1], [0, 0, 1, 1], [], []>} : vector<8x8xbf16>, vector<8x8xbf16>, vector<8x8xf32> -> vector<8x8xf32>
    %76 = vector.extract_strided_slice %55 {offsets = [0, 8], sizes = [8, 8], strides = [1, 1]} : vector<8x32xbf16> to vector<8x8xbf16>
    %77 = vector.extract_strided_slice %57 {offsets = [8, 0], sizes = [8, 8], strides = [1, 1]} : vector<32x8xbf16> to vector<8x8xbf16>
    %cst_36 = arith.constant dense<0.000000e+00> : vector<8x8xf32>
    %78 = tpu.matmul %76, %77, %cst_36 {dimension_numbers = #tpu.dot_dimension_numbers<[1], [0], [0], [1], [0, 0, 1, 1], [], []>} : vector<8x8xbf16>, vector<8x8xbf16>, vector<8x8xf32> -> vector<8x8xf32>
    %79 = arith.addf %78, %10 : vector<8x8xf32>
    %cst_37 = arith.constant dense<0xFF800000> : vector<8xf32>
    %80 = vector.multi_reduction <maximumf>, %79, %cst_37 [1] : vector<8x8xf32> to vector<8xf32>
    %81 = vector.shape_cast %80 : vector<8xf32> to vector<8x1xf32>
    %82 = vector.broadcast %81 : vector<8x1xf32> to vector<8x8xf32>
    %83 = arith.subf %79, %82 : vector<8x8xf32>
    %84 = math.exp %83 : vector<8x8xf32>
    %cst_38 = arith.constant dense<0.000000e+00> : vector<8xf32>
    %85 = vector.multi_reduction <add>, %84, %cst_38 [1] : vector<8x8xf32> to vector<8xf32>
    %86 = vector.shape_cast %85 : vector<8xf32> to vector<8x1xf32>
    %87 = tpu.reciprocal %86 {approx = true} : vector<8x1xf32> -> vector<8x1xf32>
    %88 = vector.broadcast %87 : vector<8x1xf32> to vector<8x8xf32>
    %89 = arith.mulf %84, %88 : vector<8x8xf32>
    %90 = arith.truncf %89 : vector<8x8xf32> to vector<8x8xbf16>
    %91 = vector.extract_strided_slice %58 {offsets = [0, 8], sizes = [8, 8], strides = [1, 1]} : vector<8x32xbf16> to vector<8x8xbf16>
    %cst_39 = arith.constant dense<0.000000e+00> : vector<8x8xf32>
    %92 = tpu.matmul %90, %91, %cst_39 {dimension_numbers = #tpu.dot_dimension_numbers<[1], [0], [0], [1], [0, 0, 1, 1], [], []>} : vector<8x8xbf16>, vector<8x8xbf16>, vector<8x8xf32> -> vector<8x8xf32>
    %93 = vector.extract_strided_slice %55 {offsets = [0, 16], sizes = [8, 8], strides = [1, 1]} : vector<8x32xbf16> to vector<8x8xbf16>
    %94 = vector.extract_strided_slice %57 {offsets = [16, 0], sizes = [8, 8], strides = [1, 1]} : vector<32x8xbf16> to vector<8x8xbf16>
    %cst_40 = arith.constant dense<0.000000e+00> : vector<8x8xf32>
    %95 = tpu.matmul %93, %94, %cst_40 {dimension_numbers = #tpu.dot_dimension_numbers<[1], [0], [0], [1], [0, 0, 1, 1], [], []>} : vector<8x8xbf16>, vector<8x8xbf16>, vector<8x8xf32> -> vector<8x8xf32>
    %96 = arith.addf %95, %10 : vector<8x8xf32>
    %cst_41 = arith.constant dense<0xFF800000> : vector<8xf32>
    %97 = vector.multi_reduction <maximumf>, %96, %cst_41 [1] : vector<8x8xf32> to vector<8xf32>
    %98 = vector.shape_cast %97 : vector<8xf32> to vector<8x1xf32>
    %99 = vector.broadcast %98 : vector<8x1xf32> to vector<8x8xf32>
    %100 = arith.subf %96, %99 : vector<8x8xf32>
    %101 = math.exp %100 : vector<8x8xf32>
    %cst_42 = arith.constant dense<0.000000e+00> : vector<8xf32>
    %102 = vector.multi_reduction <add>, %101, %cst_42 [1] : vector<8x8xf32> to vector<8xf32>
    %103 = vector.shape_cast %102 : vector<8xf32> to vector<8x1xf32>
    %104 = tpu.reciprocal %103 {approx = true} : vector<8x1xf32> -> vector<8x1xf32>
    %105 = vector.broadcast %104 : vector<8x1xf32> to vector<8x8xf32>
    %106 = arith.mulf %101, %105 : vector<8x8xf32>
    %107 = arith.truncf %106 : vector<8x8xf32> to vector<8x8xbf16>
    %108 = vector.extract_strided_slice %58 {offsets = [0, 16], sizes = [8, 8], strides = [1, 1]} : vector<8x32xbf16> to vector<8x8xbf16>
    %cst_43 = arith.constant dense<0.000000e+00> : vector<8x8xf32>
    %109 = tpu.matmul %107, %108, %cst_43 {dimension_numbers = #tpu.dot_dimension_numbers<[1], [0], [0], [1], [0, 0, 1, 1], [], []>} : vector<8x8xbf16>, vector<8x8xbf16>, vector<8x8xf32> -> vector<8x8xf32>
    %110 = vector.extract_strided_slice %55 {offsets = [0, 24], sizes = [8, 8], strides = [1, 1]} : vector<8x32xbf16> to vector<8x8xbf16>
    %111 = vector.extract_strided_slice %57 {offsets = [24, 0], sizes = [8, 8], strides = [1, 1]} : vector<32x8xbf16> to vector<8x8xbf16>
    %cst_44 = arith.constant dense<0.000000e+00> : vector<8x8xf32>
    %112 = tpu.matmul %110, %111, %cst_44 {dimension_numbers = #tpu.dot_dimension_numbers<[1], [0], [0], [1], [0, 0, 1, 1], [], []>} : vector<8x8xbf16>, vector<8x8xbf16>, vector<8x8xf32> -> vector<8x8xf32>
    %113 = arith.addf %112, %10 : vector<8x8xf32>
    %cst_45 = arith.constant dense<0xFF800000> : vector<8xf32>
    %114 = vector.multi_reduction <maximumf>, %113, %cst_45 [1] : vector<8x8xf32> to vector<8xf32>
    %115 = vector.shape_cast %114 : vector<8xf32> to vector<8x1xf32>
    %116 = vector.broadcast %115 : vector<8x1xf32> to vector<8x8xf32>
    %117 = arith.subf %113, %116 : vector<8x8xf32>
    %118 = math.exp %117 : vector<8x8xf32>
    %cst_46 = arith.constant dense<0.000000e+00> : vector<8xf32>
    %119 = vector.multi_reduction <add>, %118, %cst_46 [1] : vector<8x8xf32> to vector<8xf32>
    %120 = vector.shape_cast %119 : vector<8xf32> to vector<8x1xf32>
    %121 = tpu.reciprocal %120 {approx = true} : vector<8x1xf32> -> vector<8x1xf32>
    %122 = vector.broadcast %121 : vector<8x1xf32> to vector<8x8xf32>
    %123 = arith.mulf %118, %122 : vector<8x8xf32>
    %124 = arith.truncf %123 : vector<8x8xf32> to vector<8x8xbf16>
    %125 = vector.extract_strided_slice %58 {offsets = [0, 24], sizes = [8, 8], strides = [1, 1]} : vector<8x32xbf16> to vector<8x8xbf16>
    %cst_47 = arith.constant dense<0.000000e+00> : vector<8x8xf32>
    %126 = tpu.matmul %124, %125, %cst_47 {dimension_numbers = #tpu.dot_dimension_numbers<[1], [0], [0], [1], [0, 0, 1, 1], [], []>} : vector<8x8xbf16>, vector<8x8xbf16>, vector<8x8xf32> -> vector<8x8xf32>
    %127 = tpu.concatenate %75, %92, %109, %126 in 1 : vector<8x8xf32>, vector<8x8xf32>, vector<8x8xf32>, vector<8x8xf32> -> vector<8x32xf32>
    %128 = arith.truncf %127 : vector<8x32xf32> to vector<8x32xbf16>
    %cst_48 = arith.constant dense<0.000000e+00> : vector<8x32xf32>
    %129 = tpu.matmul %128, %47, %cst_48 {dimension_numbers = #tpu.dot_dimension_numbers<[1], [0], [0], [1], [0, 0, 1, 1], [], []>} : vector<8x32xbf16>, vector<32x32xbf16>, vector<8x32xf32> -> vector<8x32xf32>
    %130 = vector.broadcast %48 : vector<1x32xf32> to vector<8x32xf32>
    %131 = arith.addf %129, %130 : vector<8x32xf32>
    %132 = arith.addf %131, %2 : vector<8x32xf32>
    %133 = vector.extract_strided_slice %17 {offsets = [2, 0], sizes = [1, 32], strides = [1, 1]} : vector<6x32xf32> to vector<1x32xf32>
    %134 = vector.extract_strided_slice %17 {offsets = [3, 0], sizes = [1, 32], strides = [1, 1]} : vector<6x32xf32> to vector<1x32xf32>
    %cst_49 = arith.constant dense<0.000000e+00> : vector<8xf32>
    %135 = vector.multi_reduction <add>, %132, %cst_49 [1] : vector<8x32xf32> to vector<8xf32>
    %136 = vector.shape_cast %135 : vector<8xf32> to vector<8x1xf32>
    %cst_50 = arith.constant 3.200000e+01 : f32
    %137 = vector.broadcast %cst_50 : f32 to vector<8x1xf32>
    %138 = arith.divf %136, %137 : vector<8x1xf32>
    %139 = vector.broadcast %138 : vector<8x1xf32> to vector<8x32xf32>
    %140 = arith.subf %132, %139 : vector<8x32xf32>
    %141 = arith.mulf %140, %140 : vector<8x32xf32>
    %cst_51 = arith.constant dense<0.000000e+00> : vector<8xf32>
    %142 = vector.multi_reduction <add>, %141, %cst_51 [1] : vector<8x32xf32> to vector<8xf32>
    %143 = vector.shape_cast %142 : vector<8xf32> to vector<8x1xf32>
    %cst_52 = arith.constant 3.200000e+01 : f32
    %144 = vector.broadcast %cst_52 : f32 to vector<8x1xf32>
    %145 = arith.divf %143, %144 : vector<8x1xf32>
    %146 = vector.broadcast %138 : vector<8x1xf32> to vector<8x32xf32>
    %147 = arith.subf %132, %146 : vector<8x32xf32>
    %cst_53 = arith.constant 9.99999997E-7 : f32
    %148 = vector.broadcast %cst_53 : f32 to vector<8x1xf32>
    %149 = arith.addf %145, %148 : vector<8x1xf32>
    %150 = math.rsqrt %149 : vector<8x1xf32>
    %151 = vector.broadcast %150 : vector<8x1xf32> to vector<8x32xf32>
    %152 = arith.mulf %147, %151 : vector<8x32xf32>
    %153 = vector.broadcast %133 : vector<1x32xf32> to vector<8x32xf32>
    %154 = arith.mulf %152, %153 : vector<8x32xf32>
    %155 = vector.broadcast %134 : vector<1x32xf32> to vector<8x32xf32>
    %156 = arith.addf %154, %155 : vector<8x32xf32>
    %157 = arith.truncf %156 : vector<8x32xf32> to vector<8x32xbf16>
    %c1 = arith.constant 1 : index
    %c0_54 = arith.constant 0 : index
    %c0_55 = arith.constant 0 : index
    %158 = vector.load %arg7[%c1, %c0_54, %c0_55] : memref<2x32x96xbf16, #tpu.memory_space<vmem>>, vector<1x32x96xbf16>
    %159 = vector.shape_cast %158 : vector<1x32x96xbf16> to vector<32x96xbf16>
    %c1_56 = arith.constant 1 : index
    %c0_57 = arith.constant 0 : index
    %160 = vector.load %arg8[%c1_56, %c0_57] : memref<2x96xf32, #tpu.memory_space<vmem>>, vector<1x96xf32>
    %c1_58 = arith.constant 1 : index
    %c0_59 = arith.constant 0 : index
    %c0_60 = arith.constant 0 : index
    %161 = vector.load %arg9[%c1_58, %c0_59, %c0_60] : memref<2x32x32xbf16, #tpu.memory_space<vmem>>, vector<1x32x32xbf16>
    %162 = vector.shape_cast %161 : vector<1x32x32xbf16> to vector<32x32xbf16>
    %c1_61 = arith.constant 1 : index
    %c0_62 = arith.constant 0 : index
    %163 = vector.load %arg10[%c1_61, %c0_62] : memref<2x32xf32, #tpu.memory_space<vmem>>, vector<1x32xf32>
    %164 = vector.extract_strided_slice %159 {offsets = [0, 0], sizes = [32, 32], strides = [1, 1]} : vector<32x96xbf16> to vector<32x32xbf16>
    %cst_63 = arith.constant dense<0.000000e+00> : vector<8x32xf32>
    %165 = tpu.matmul %157, %164, %cst_63 {dimension_numbers = #tpu.dot_dimension_numbers<[1], [0], [0], [1], [0, 0, 1, 1], [], []>} : vector<8x32xbf16>, vector<32x32xbf16>, vector<8x32xf32> -> vector<8x32xf32>
    %166 = vector.extract_strided_slice %160 {offsets = [0, 0], sizes = [1, 32], strides = [1, 1]} : vector<1x96xf32> to vector<1x32xf32>
    %167 = vector.broadcast %166 : vector<1x32xf32> to vector<8x32xf32>
    %168 = arith.addf %165, %167 : vector<8x32xf32>
    %169 = vector.extract_strided_slice %159 {offsets = [0, 32], sizes = [32, 64], strides = [1, 1]} : vector<32x96xbf16> to vector<32x64xbf16>
    %cst_64 = arith.constant dense<0.000000e+00> : vector<10x64xf32>
    %170 = tpu.matmul %4, %169, %cst_64 {dimension_numbers = #tpu.dot_dimension_numbers<[1], [0], [0], [1], [0, 0, 1, 1], [], []>} : vector<10x32xbf16>, vector<32x64xbf16>, vector<10x64xf32> -> vector<10x64xf32>
    %171 = vector.extract_strided_slice %160 {offsets = [0, 32], sizes = [1, 64], strides = [1, 1]} : vector<1x96xf32> to vector<1x64xf32>
    %172 = vector.broadcast %171 : vector<1x64xf32> to vector<10x64xf32>
    %173 = arith.addf %170, %172 : vector<10x64xf32>
    %174 = vector.extract_strided_slice %173 {offsets = [0, 0], sizes = [10, 32], strides = [1, 1]} : vector<10x64xf32> to vector<10x32xf32>
    %175 = vector.extract_strided_slice %173 {offsets = [0, 32], sizes = [10, 32], strides = [1, 1]} : vector<10x64xf32> to vector<10x32xf32>
    %176 = arith.truncf %168 : vector<8x32xf32> to vector<8x32xbf16>
    %177 = tpu.transpose %174, [1, 0] : vector<10x32xf32> -> vector<32x10xf32>
    %178 = arith.truncf %177 : vector<32x10xf32> to vector<32x10xbf16>
    %179 = arith.truncf %175 : vector<10x32xf32> to vector<10x32xbf16>
    %180 = vector.extract_strided_slice %176 {offsets = [0, 0], sizes = [8, 8], strides = [1, 1]} : vector<8x32xbf16> to vector<8x8xbf16>
    %181 = vector.extract_strided_slice %178 {offsets = [0, 0], sizes = [8, 10], strides = [1, 1]} : vector<32x10xbf16> to vector<8x10xbf16>
    %cst_65 = arith.constant dense<0.000000e+00> : vector<8x10xf32>
    %182 = tpu.matmul %180, %181, %cst_65 {dimension_numbers = #tpu.dot_dimension_numbers<[1], [0], [0], [1], [0, 0, 1, 1], [], []>} : vector<8x8xbf16>, vector<8x10xbf16>, vector<8x10xf32> -> vector<8x10xf32>
    %183 = arith.addf %182, %16 : vector<8x10xf32>
    %cst_66 = arith.constant dense<0xFF800000> : vector<8xf32>
    %184 = vector.multi_reduction <maximumf>, %183, %cst_66 [1] : vector<8x10xf32> to vector<8xf32>
    %185 = vector.shape_cast %184 : vector<8xf32> to vector<8x1xf32>
    %186 = vector.broadcast %185 : vector<8x1xf32> to vector<8x10xf32>
    %187 = arith.subf %183, %186 : vector<8x10xf32>
    %188 = math.exp %187 : vector<8x10xf32>
    %cst_67 = arith.constant dense<0.000000e+00> : vector<8xf32>
    %189 = vector.multi_reduction <add>, %188, %cst_67 [1] : vector<8x10xf32> to vector<8xf32>
    %190 = vector.shape_cast %189 : vector<8xf32> to vector<8x1xf32>
    %191 = tpu.reciprocal %190 {approx = true} : vector<8x1xf32> -> vector<8x1xf32>
    %192 = vector.broadcast %191 : vector<8x1xf32> to vector<8x10xf32>
    %193 = arith.mulf %188, %192 : vector<8x10xf32>
    %194 = arith.truncf %193 : vector<8x10xf32> to vector<8x10xbf16>
    %195 = vector.extract_strided_slice %179 {offsets = [0, 0], sizes = [10, 8], strides = [1, 1]} : vector<10x32xbf16> to vector<10x8xbf16>
    %cst_68 = arith.constant dense<0.000000e+00> : vector<8x8xf32>
    %196 = tpu.matmul %194, %195, %cst_68 {dimension_numbers = #tpu.dot_dimension_numbers<[1], [0], [0], [1], [0, 0, 1, 1], [], []>} : vector<8x10xbf16>, vector<10x8xbf16>, vector<8x8xf32> -> vector<8x8xf32>
    %197 = vector.extract_strided_slice %176 {offsets = [0, 8], sizes = [8, 8], strides = [1, 1]} : vector<8x32xbf16> to vector<8x8xbf16>
    %198 = vector.extract_strided_slice %178 {offsets = [8, 0], sizes = [8, 10], strides = [1, 1]} : vector<32x10xbf16> to vector<8x10xbf16>
    %cst_69 = arith.constant dense<0.000000e+00> : vector<8x10xf32>
    %199 = tpu.matmul %197, %198, %cst_69 {dimension_numbers = #tpu.dot_dimension_numbers<[1], [0], [0], [1], [0, 0, 1, 1], [], []>} : vector<8x8xbf16>, vector<8x10xbf16>, vector<8x10xf32> -> vector<8x10xf32>
    %200 = arith.addf %199, %16 : vector<8x10xf32>
    %cst_70 = arith.constant dense<0xFF800000> : vector<8xf32>
    %201 = vector.multi_reduction <maximumf>, %200, %cst_70 [1] : vector<8x10xf32> to vector<8xf32>
    %202 = vector.shape_cast %201 : vector<8xf32> to vector<8x1xf32>
    %203 = vector.broadcast %202 : vector<8x1xf32> to vector<8x10xf32>
    %204 = arith.subf %200, %203 : vector<8x10xf32>
    %205 = math.exp %204 : vector<8x10xf32>
    %cst_71 = arith.constant dense<0.000000e+00> : vector<8xf32>
    %206 = vector.multi_reduction <add>, %205, %cst_71 [1] : vector<8x10xf32> to vector<8xf32>
    %207 = vector.shape_cast %206 : vector<8xf32> to vector<8x1xf32>
    %208 = tpu.reciprocal %207 {approx = true} : vector<8x1xf32> -> vector<8x1xf32>
    %209 = vector.broadcast %208 : vector<8x1xf32> to vector<8x10xf32>
    %210 = arith.mulf %205, %209 : vector<8x10xf32>
    %211 = arith.truncf %210 : vector<8x10xf32> to vector<8x10xbf16>
    %212 = vector.extract_strided_slice %179 {offsets = [0, 8], sizes = [10, 8], strides = [1, 1]} : vector<10x32xbf16> to vector<10x8xbf16>
    %cst_72 = arith.constant dense<0.000000e+00> : vector<8x8xf32>
    %213 = tpu.matmul %211, %212, %cst_72 {dimension_numbers = #tpu.dot_dimension_numbers<[1], [0], [0], [1], [0, 0, 1, 1], [], []>} : vector<8x10xbf16>, vector<10x8xbf16>, vector<8x8xf32> -> vector<8x8xf32>
    %214 = vector.extract_strided_slice %176 {offsets = [0, 16], sizes = [8, 8], strides = [1, 1]} : vector<8x32xbf16> to vector<8x8xbf16>
    %215 = vector.extract_strided_slice %178 {offsets = [16, 0], sizes = [8, 10], strides = [1, 1]} : vector<32x10xbf16> to vector<8x10xbf16>
    %cst_73 = arith.constant dense<0.000000e+00> : vector<8x10xf32>
    %216 = tpu.matmul %214, %215, %cst_73 {dimension_numbers = #tpu.dot_dimension_numbers<[1], [0], [0], [1], [0, 0, 1, 1], [], []>} : vector<8x8xbf16>, vector<8x10xbf16>, vector<8x10xf32> -> vector<8x10xf32>
    %217 = arith.addf %216, %16 : vector<8x10xf32>
    %cst_74 = arith.constant dense<0xFF800000> : vector<8xf32>
    %218 = vector.multi_reduction <maximumf>, %217, %cst_74 [1] : vector<8x10xf32> to vector<8xf32>
    %219 = vector.shape_cast %218 : vector<8xf32> to vector<8x1xf32>
    %220 = vector.broadcast %219 : vector<8x1xf32> to vector<8x10xf32>
    %221 = arith.subf %217, %220 : vector<8x10xf32>
    %222 = math.exp %221 : vector<8x10xf32>
    %cst_75 = arith.constant dense<0.000000e+00> : vector<8xf32>
    %223 = vector.multi_reduction <add>, %222, %cst_75 [1] : vector<8x10xf32> to vector<8xf32>
    %224 = vector.shape_cast %223 : vector<8xf32> to vector<8x1xf32>
    %225 = tpu.reciprocal %224 {approx = true} : vector<8x1xf32> -> vector<8x1xf32>
    %226 = vector.broadcast %225 : vector<8x1xf32> to vector<8x10xf32>
    %227 = arith.mulf %222, %226 : vector<8x10xf32>
    %228 = arith.truncf %227 : vector<8x10xf32> to vector<8x10xbf16>
    %229 = vector.extract_strided_slice %179 {offsets = [0, 16], sizes = [10, 8], strides = [1, 1]} : vector<10x32xbf16> to vector<10x8xbf16>
    %cst_76 = arith.constant dense<0.000000e+00> : vector<8x8xf32>
    %230 = tpu.matmul %228, %229, %cst_76 {dimension_numbers = #tpu.dot_dimension_numbers<[1], [0], [0], [1], [0, 0, 1, 1], [], []>} : vector<8x10xbf16>, vector<10x8xbf16>, vector<8x8xf32> -> vector<8x8xf32>
    %231 = vector.extract_strided_slice %176 {offsets = [0, 24], sizes = [8, 8], strides = [1, 1]} : vector<8x32xbf16> to vector<8x8xbf16>
    %232 = vector.extract_strided_slice %178 {offsets = [24, 0], sizes = [8, 10], strides = [1, 1]} : vector<32x10xbf16> to vector<8x10xbf16>
    %cst_77 = arith.constant dense<0.000000e+00> : vector<8x10xf32>
    %233 = tpu.matmul %231, %232, %cst_77 {dimension_numbers = #tpu.dot_dimension_numbers<[1], [0], [0], [1], [0, 0, 1, 1], [], []>} : vector<8x8xbf16>, vector<8x10xbf16>, vector<8x10xf32> -> vector<8x10xf32>
    %234 = arith.addf %233, %16 : vector<8x10xf32>
    %cst_78 = arith.constant dense<0xFF800000> : vector<8xf32>
    %235 = vector.multi_reduction <maximumf>, %234, %cst_78 [1] : vector<8x10xf32> to vector<8xf32>
    %236 = vector.shape_cast %235 : vector<8xf32> to vector<8x1xf32>
    %237 = vector.broadcast %236 : vector<8x1xf32> to vector<8x10xf32>
    %238 = arith.subf %234, %237 : vector<8x10xf32>
    %239 = math.exp %238 : vector<8x10xf32>
    %cst_79 = arith.constant dense<0.000000e+00> : vector<8xf32>
    %240 = vector.multi_reduction <add>, %239, %cst_79 [1] : vector<8x10xf32> to vector<8xf32>
    %241 = vector.shape_cast %240 : vector<8xf32> to vector<8x1xf32>
    %242 = tpu.reciprocal %241 {approx = true} : vector<8x1xf32> -> vector<8x1xf32>
    %243 = vector.broadcast %242 : vector<8x1xf32> to vector<8x10xf32>
    %244 = arith.mulf %239, %243 : vector<8x10xf32>
    %245 = arith.truncf %244 : vector<8x10xf32> to vector<8x10xbf16>
    %246 = vector.extract_strided_slice %179 {offsets = [0, 24], sizes = [10, 8], strides = [1, 1]} : vector<10x32xbf16> to vector<10x8xbf16>
    %cst_80 = arith.constant dense<0.000000e+00> : vector<8x8xf32>
    %247 = tpu.matmul %245, %246, %cst_80 {dimension_numbers = #tpu.dot_dimension_numbers<[1], [0], [0], [1], [0, 0, 1, 1], [], []>} : vector<8x10xbf16>, vector<10x8xbf16>, vector<8x8xf32> -> vector<8x8xf32>
    %248 = tpu.concatenate %196, %213, %230, %247 in 1 : vector<8x8xf32>, vector<8x8xf32>, vector<8x8xf32>, vector<8x8xf32> -> vector<8x32xf32>
    %249 = arith.truncf %248 : vector<8x32xf32> to vector<8x32xbf16>
    %cst_81 = arith.constant dense<0.000000e+00> : vector<8x32xf32>
    %250 = tpu.matmul %249, %162, %cst_81 {dimension_numbers = #tpu.dot_dimension_numbers<[1], [0], [0], [1], [0, 0, 1, 1], [], []>} : vector<8x32xbf16>, vector<32x32xbf16>, vector<8x32xf32> -> vector<8x32xf32>
    %251 = vector.broadcast %163 : vector<1x32xf32> to vector<8x32xf32>
    %252 = arith.addf %250, %251 : vector<8x32xf32>
    %253 = arith.addf %252, %132 : vector<8x32xf32>
    %254 = vector.extract_strided_slice %17 {offsets = [4, 0], sizes = [1, 32], strides = [1, 1]} : vector<6x32xf32> to vector<1x32xf32>
    %255 = vector.extract_strided_slice %17 {offsets = [5, 0], sizes = [1, 32], strides = [1, 1]} : vector<6x32xf32> to vector<1x32xf32>
    %cst_82 = arith.constant dense<0.000000e+00> : vector<8xf32>
    %256 = vector.multi_reduction <add>, %253, %cst_82 [1] : vector<8x32xf32> to vector<8xf32>
    %257 = vector.shape_cast %256 : vector<8xf32> to vector<8x1xf32>
    %cst_83 = arith.constant 3.200000e+01 : f32
    %258 = vector.broadcast %cst_83 : f32 to vector<8x1xf32>
    %259 = arith.divf %257, %258 : vector<8x1xf32>
    %260 = vector.broadcast %259 : vector<8x1xf32> to vector<8x32xf32>
    %261 = arith.subf %253, %260 : vector<8x32xf32>
    %262 = arith.mulf %261, %261 : vector<8x32xf32>
    %cst_84 = arith.constant dense<0.000000e+00> : vector<8xf32>
    %263 = vector.multi_reduction <add>, %262, %cst_84 [1] : vector<8x32xf32> to vector<8xf32>
    %264 = vector.shape_cast %263 : vector<8xf32> to vector<8x1xf32>
    %cst_85 = arith.constant 3.200000e+01 : f32
    %265 = vector.broadcast %cst_85 : f32 to vector<8x1xf32>
    %266 = arith.divf %264, %265 : vector<8x1xf32>
    %267 = vector.broadcast %259 : vector<8x1xf32> to vector<8x32xf32>
    %268 = arith.subf %253, %267 : vector<8x32xf32>
    %cst_86 = arith.constant 9.99999997E-7 : f32
    %269 = vector.broadcast %cst_86 : f32 to vector<8x1xf32>
    %270 = arith.addf %266, %269 : vector<8x1xf32>
    %271 = math.rsqrt %270 : vector<8x1xf32>
    %272 = vector.broadcast %271 : vector<8x1xf32> to vector<8x32xf32>
    %273 = arith.mulf %268, %272 : vector<8x32xf32>
    %274 = vector.broadcast %254 : vector<1x32xf32> to vector<8x32xf32>
    %275 = arith.mulf %273, %274 : vector<8x32xf32>
    %276 = vector.broadcast %255 : vector<1x32xf32> to vector<8x32xf32>
    %277 = arith.addf %275, %276 : vector<8x32xf32>
    %278 = arith.truncf %277 : vector<8x32xf32> to vector<8x32xbf16>
    %c0_87 = arith.constant 0 : index
    %c0_88 = arith.constant 0 : index
    %279 = vector.load %arg12[%c0_87, %c0_88] : memref<32x64xbf16, #tpu.memory_space<vmem>>, vector<32x64xbf16>
    %cst_89 = arith.constant dense<0.000000e+00> : vector<8x64xf32>
    %280 = tpu.matmul %278, %279, %cst_89 {dimension_numbers = #tpu.dot_dimension_numbers<[1], [0], [0], [1], [0, 0, 1, 1], [], []>} : vector<8x32xbf16>, vector<32x64xbf16>, vector<8x64xf32> -> vector<8x64xf32>
    %c0_90 = arith.constant 0 : index
    %c0_91 = arith.constant 0 : index
    %281 = vector.load %arg13[%c0_90, %c0_91] : memref<2x64xf32, #tpu.memory_space<vmem>>, vector<1x64xf32>
    %282 = vector.broadcast %281 : vector<1x64xf32> to vector<8x64xf32>
    %283 = arith.addf %280, %282 : vector<8x64xf32>
    %cst_92 = arith.constant 0.000000e+00 : f32
    %284 = vector.broadcast %cst_92 : f32 to vector<8x64xf32>
    %285 = arith.maximumf %283, %284 : vector<8x64xf32>
    %286 = arith.truncf %285 : vector<8x64xf32> to vector<8x64xbf16>
    %c0_93 = arith.constant 0 : index
    %c0_94 = arith.constant 0 : index
    %287 = vector.load %arg14[%c0_93, %c0_94] : memref<64x32xbf16, #tpu.memory_space<vmem>>, vector<64x32xbf16>
    %cst_95 = arith.constant dense<0.000000e+00> : vector<8x32xf32>
    %288 = tpu.matmul %286, %287, %cst_95 {dimension_numbers = #tpu.dot_dimension_numbers<[1], [0], [0], [1], [0, 0, 1, 1], [], []>} : vector<8x64xbf16>, vector<64x32xbf16>, vector<8x32xf32> -> vector<8x32xf32>
    %c1_96 = arith.constant 1 : index
    %c0_97 = arith.constant 0 : index
    %289 = vector.load %arg13[%c1_96, %c0_97] : memref<2x64xf32, #tpu.memory_space<vmem>>, vector<1x32xf32>
    %290 = vector.broadcast %289 : vector<1x32xf32> to vector<8x32xf32>
    %291 = arith.addf %288, %290 : vector<8x32xf32>
    %292 = arith.addf %291, %253 : vector<8x32xf32>
    %c0_98 = arith.constant 0 : index
    %c0_99 = arith.constant 0 : index
    %c0_100 = arith.constant 0 : index
    %293 = vector.load %arg15[%c0_98, %c0_99, %c0_100] : memref<1x8x32xf32, #tpu.memory_space<vmem>>, vector<1x8x32xf32>
    %294 = vector.shape_cast %293 : vector<1x8x32xf32> to vector<8x32xf32>
    %295 = vector.shape_cast %292 : vector<8x32xf32> to vector<1x8x32xf32>
    tpu.vector_store %arg15[%c0_98, %c0_99, %c0_100], %295 {strides = array<i32>} : memref<1x8x32xf32, #tpu.memory_space<vmem>>, vector<1x8x32xf32>,
    %c0_101 = arith.constant 0 : index
    %c0_102 = arith.constant 0 : index
    %c0_103 = arith.constant 0 : index
    %c0_104 = arith.constant 0 : index
    %296 = vector.load %arg16[%c0_101, %c0_102, %c0_103, %c0_104] : memref<1x1x8x10xf32, #tpu.memory_space<vmem>>, vector<1x1x8x10xf32>
    %297 = vector.shape_cast %296 : vector<1x1x8x10xf32> to vector<8x10xf32>
    %298 = vector.shape_cast %193 : vector<8x10xf32> to vector<1x1x8x10xf32>
    tpu.vector_store %arg16[%c0_101, %c0_102, %c0_103, %c0_104], %298 {strides = array<i32>} : memref<1x1x8x10xf32, #tpu.memory_space<vmem>>, vector<1x1x8x10xf32>,
    return
  }
  func.func @transform_0(%arg0: i32) -> (i32, i32, i32) {
    %c0_i32 = arith.constant 0 : i32
    %c0_i32_0 = arith.constant 0 : i32
    %c0_i32_1 = arith.constant 0 : i32
    return %arg0, %c0_i32, %c0_i32_0 : i32, i32, i32
  }
  func.func @transform_1(%arg0: i32) -> (i32, i32, i32) {
    %c0_i32 = arith.constant 0 : i32
    %c0_i32_0 = arith.constant 0 : i32
    %c0_i32_1 = arith.constant 0 : i32
    return %arg0, %c0_i32, %c0_i32_0 : i32, i32, i32
  }
  func.func @transform_2(%arg0: i32) -> (i32, i32) {
    %c0_i32 = arith.constant 0 : i32
    %c0_i32_0 = arith.constant 0 : i32
    %c0_i32_1 = arith.constant 0 : i32
    return %c0_i32, %c0_i32_0 : i32, i32
  }
  func.func @transform_3(%arg0: i32) -> (i32, i32) {
    %c0_i32 = arith.constant 0 : i32
    %c0_i32_0 = arith.constant 0 : i32
    %c0_i32_1 = arith.constant 0 : i32
    return %c0_i32, %c0_i32_0 : i32, i32
  }
  func.func @transform_4(%arg0: i32) -> (i32, i32, i32) {
    %c0_i32 = arith.constant 0 : i32
    %c0_i32_0 = arith.constant 0 : i32
    %c0_i32_1 = arith.constant 0 : i32
    return %arg0, %c0_i32, %c0_i32_0 : i32, i32, i32
  }
  func.func @transform_5(%arg0: i32) -> (i32, i32, i32) {
    %c0_i32 = arith.constant 0 : i32
    %c0_i32_0 = arith.constant 0 : i32
    %c0_i32_1 = arith.constant 0 : i32
    return %arg0, %c0_i32, %c0_i32_0 : i32, i32, i32
  }
  func.func @transform_6(%arg0: i32) -> (i32, i32, i32) {
    %c0_i32 = arith.constant 0 : i32
    %c0_i32_0 = arith.constant 0 : i32
    %c0_i32_1 = arith.constant 0 : i32
    %c0_i32_2 = arith.constant 0 : i32
    return %c0_i32, %c0_i32_0, %c0_i32_1 : i32, i32, i32
  }
  func.func @transform_7(%arg0: i32) -> (i32, i32) {
    %c0_i32 = arith.constant 0 : i32
    %c0_i32_0 = arith.constant 0 : i32
    %c0_i32_1 = arith.constant 0 : i32
    return %c0_i32, %c0_i32_0 : i32, i32
  }
  func.func @transform_8(%arg0: i32) -> (i32, i32, i32) {
    %c0_i32 = arith.constant 0 : i32
    %c0_i32_0 = arith.constant 0 : i32
    %c0_i32_1 = arith.constant 0 : i32
    %c0_i32_2 = arith.constant 0 : i32
    return %c0_i32, %c0_i32_0, %c0_i32_1 : i32, i32, i32
  }
  func.func @transform_9(%arg0: i32) -> (i32, i32) {
    %c0_i32 = arith.constant 0 : i32
    %c0_i32_0 = arith.constant 0 : i32
    %c0_i32_1 = arith.constant 0 : i32
    return %c0_i32, %c0_i32_0 : i32, i32
  }
  func.func @transform_10(%arg0: i32) -> (i32, i32) {
    %c0_i32 = arith.constant 0 : i32
    %c0_i32_0 = arith.constant 0 : i32
    %c0_i32_1 = arith.constant 0 : i32
    return %c0_i32, %c0_i32_0 : i32, i32
  }
  func.func @transform_11(%arg0: i32) -> (i32, i32) {
    %c0_i32 = arith.constant 0 : i32
    %c0_i32_0 = arith.constant 0 : i32
    %c0_i32_1 = arith.constant 0 : i32
    return %c0_i32, %c0_i32_0 : i32, i32
  }
  func.func @transform_12(%arg0: i32) -> (i32, i32) {
    %c0_i32 = arith.constant 0 : i32
    %c0_i32_0 = arith.constant 0 : i32
    %c0_i32_1 = arith.constant 0 : i32
    return %c0_i32, %c0_i32_0 : i32, i32
  }
  func.func @transform_13(%arg0: i32) -> (i32, i32) {
    %c0_i32 = arith.constant 0 : i32
    %c0_i32_0 = arith.constant 0 : i32
    %c0_i32_1 = arith.constant 0 : i32
    return %c0_i32, %c0_i32_0 : i32, i32
  }
  func.func @transform_14(%arg0: i32) -> (i32, i32, i32) {
    %c0_i32 = arith.constant 0 : i32
    %c0_i32_0 = arith.constant 0 : i32
    %c0_i32_1 = arith.constant 0 : i32
    return %arg0, %c0_i32, %c0_i32_0 : i32, i32, i32
  }
  func.func @transform_15(%arg0: i32) -> (i32, i32, i32, i32) {
    %c0_i32 = arith.constant 0 : i32
    %c0_i32_0 = arith.constant 0 : i32
    %c0_i32_1 = arith.constant 0 : i32
    %c0_i32_2 = arith.constant 0 : i32
    return %arg0, %c0_i32, %c0_i32_0, %c0_i32_1 : i32, i32, i32, i32
  }
}

</mosaic_0001>

<bundles_post_ra>
// kernel: tpu_custom_call.1
= control target key start
LH: loop header
LB: loop body
LE: loop exit
PB: predicated region body
PF: predicated region fallthrough
CT: control target
= control target key end

     0   :  { %s3864_s0 = inlined_call_operand.hbm [shape: bf16[2,8,32], index: 0, kind: input, shape index: {}]   ;;  %s3865_s1 = inlined_call_operand.vmem [shape: bf16[2,10,32], index: 1, kind: input, shape index: {}]   ;;  %s3866_s2 = inlined_call_operand.hbm [shape: bf16[8,8], index: 2, kind: input, shape index: {}]   ;;  %s3867_s3 = inlined_call_operand.hbm [shape: bf16[8,10], index: 3, kind: input, shape index: {}]   ;;  %s3868_s4 = inlined_call_operand.hbm [shape: f32[2,1,8], index: 4, kind: input, shape index: {}]   ;;  %s3869_s5 = inlined_call_operand.hbm [shape: f32[2,1,10], index: 5, kind: input, shape index: {}]   ;;  %s3870_s6 = inlined_call_operand.vmem [shape: bf16[2,32,96], index: 6, kind: input, shape index: {}]   ;;  %s3871_s7 = inlined_call_operand.hbm [shape: f32[2,96], index: 7, kind: input, shape index: {}]   ;;  %s3872_s8 = inlined_call_operand.vmem [shape: bf16[2,32,32], index: 8, kind: input, shape index: {}]   ;;  %s3873_s9 = inlined_call_operand.vmem [shape: f32[2,32], index: 9, kind: input, shape index: {}]   ;;  %s3874_s10 = inlined_call_operand.vmem [shape: f32[6,32], index: 10, kind: input, shape index: {}]   ;;  %s3875_s11 = inlined_call_operand.hbm [shape: bf16[32,64], index: 11, kind: input, shape index: {}]   ;;  %s3876_s12 = inlined_call_operand.vmem [shape: f32[2,64], index: 12, kind: input, shape index: {}]   ;;  %s3877_s13 = inlined_call_operand.vmem [shape: bf16[64,32], index: 13, kind: input, shape index: {}]   ;;  %s3878_s14 = inlined_call_operand.hbm [shape: f32[2,8,32], index: 14, kind: output, shape index: {0}]   ;;  %s3879_s15 = inlined_call_operand.hbm [shape: f32[2,1,8,10], index: 15, kind: output, shape index: {1}]  }
   0x1   :  { %3903 = sst [smem:[#allocation29_spill]] %s3865_s1 }
   0x2   :  { %3904 = sst [smem:[#allocation30_spill]] %s3866_s2 }
   0x3   :  { %3905 = sst [smem:[#allocation31_spill]] %s3867_s3 }
   0x4   :  { %3906 = sst [smem:[#allocation32_spill]] %s3868_s4 }
   0x5   :  { %3907 = sst [smem:[#allocation33_spill]] %s3871_s7 }
   0x6   :  { %3908 = sst [smem:[#allocation34_spill]] %s3873_s9 }
   0x7   :  { %3909 = sst [smem:[#allocation35_spill]] %s3876_s12 }
   0x8   :  { %3910 = sst [smem:[#allocation36_spill]] %s3877_s13 }
   0x9   :  { %3911 = sst [smem:[#allocation37_spill]] %s3878_s14 }
   0xa   :  { %3912 = sst [smem:[#allocation38_spill]] %s3879_s15 }
   0xb   :  { %21 = vsyncpa [#allocation3], 0 }
   0xc   :  { %23 = vsyncpa [#allocation3 + $0x1], 0 }
   0xd   :  { %24 = vsyncpa [#allocation6], 0 }
   0xe   :  { %25 = vsyncpa [#allocation9], 0 }
   0xf   :  { %27 = vsyncpa [#allocation9 + $0x1], 0 }
  0x10   :  { %28 = vsyncpa [#allocation12], 0 }
  0x11   :  { %29 = vsyncpa [#allocation4], 0 }
  0x12   :  { %31 = vsyncpa [#allocation4 + $0x1], 0 }
  0x13   :  { %32 = vsyncpa [#allocation16], 0 }
  0x14   :  { %34 = vsyncpa [#allocation16 + $0x1], 0  ;;  %s3301_s18 = smov 0   ;;  %s3303_s19 = smov 0  }
  0x15   :  { %s3305_s20 = smov 0   ;;  %s3307_s21 = smov 0  }
  0x16 LB: > { %3913 = sst [smem:[#allocation23_spill]] %s3180_s18  ;;  %s3194_s22 = smov [#allocation5]   ;;  %s3192_s21 = sphi %s3307_s21, %s3955_s21   ;;  %s3188_s20 = sphi %s3305_s20, %s3957_s20   ;;  %s3184_s19 = sphi %s3303_s19, %s3959_s19   ;;  %s3180_s18 = sphi %s3301_s18, %s3958_s18  }
  0x17   : > { %3914 = sst [smem:[#allocation24_spill]] %s3188_s20  ;;  %s424_s23 = sshll.u32 %s3194_s22, 4  ;;  %s425_s23 = int_to_ptr.vmem [resolvable:$true] %s424_s23 }
  0x18   : > { %s3322_s24 = sadd.s32 4294967295, %s3192_s21   ;;  %p2433_p0 = scmp.ge.s32.totalorder %s3192_s21, 1 }
  0x19   : > { %p3880_p1 = scmp.eq.s32.totalorder %s3322_s24, 0  ;;  %p411_p2 = scmp.lt.s32.totalorder %s3192_s21, 3 }
  0x1a   : > { %s3195_s26 = smov [#allocation11]   ;;  %s2909_s29 = scalar_lea.vmem %s425_s23, 64 }
  0x1b   : > { %p3327_p3 = pnand %p2433_p0, %p411_p2  ;;  %s449_s27 = sshll.u32 %s3195_s26, 4  ;;  %s450_s27 = int_to_ptr.vmem [resolvable:$true] %s449_s27 }
  0x1c   : > { %p2910_p8 = scmp.ne.s32.totalorder %s425_s23, %s2909_s29  ;;  %p2917_p11 = scmp.lt.s32.totalorder %s425_s23, %s425_s23 }
  0x1d   : > { %s3915_s25 = scalar_select %p3327_p3, 1, 0 }
  0x1e   : > { %p2751_p5 = pneg %p3327_p3  ;;  %p2918_p12 = scmp.lt.s32.totalorder %s2909_s29, %s2909_s29 }
  0x20   : > { %p3336_p6 = pnand %p2751_p5, %p3880_p1  ;;  %p2919_p13 = por %p2918_p12, %p2917_p11 }
  0x22   : > { %s3916_s28 = scalar_select %p3336_p6, 1, 0 }
  0x23   : > { %p3893_p7 = pneg %p3336_p6 }
  0x25   : > { %p2912_p9 = pnand %p2910_p8, %p3893_p7 }
  0x27   : > { %p2913_p10 = pneg %p2912_p9 }
  0x29   : > { %p2920_p0 = pnand %p2919_p13, %p2913_p10 }
  0x2b   : > { %2923 = shalt.err (!%p2920_p0)
}
  0x2c   : > { %s3917_s2 = sld [smem:[#allocation30_spill]]  ;;  %s2935_s17 = scalar_lea.vmem %s450_s27, 32 }
  0x2d   : > { %p2936_p2 = scmp.ne.s32.totalorder %s450_s27, %s2935_s17  ;;  %p2943_p8 = scmp.lt.s32.totalorder %s450_s27, %s450_s27 }
  0x2e   : > { %p2944_p9 = scmp.lt.s32.totalorder %s2935_s17, %s2935_s17 }
  0x2f   : > { %p2938_p5 = pnand %p2936_p2, %p3893_p7 }
  0x30   : > { %p2945_p1 = por %p2944_p9, %p2943_p8 }
  0x31   : > { %p2939_p4 = pneg %p2938_p5 }
  0x32   : > { %2754 = dma.hbm_to_vmem [thread:$0]  (!%p3336_p6), %s3917_s2, 64, %s425_s23, [#allocation6]  }
  0x33   : > { %p2946_p3 = pnand %p2945_p1, %p2939_p4 }
  0x35   : > { %2949 = shalt.err (!%p2946_p3)
}
  0x36   : > { %s3918_s7 = sld [smem:[#allocation33_spill]]  ;;  %s2432_s23 = sadd.s32 4294967294, %s3192_s21  }
  0x37   : > { %s3360_s29 = sadd.s32 1, %s3192_s21   ;;  %s47_s16 = sadd.s32 1, %s3188_s20 }
  0x38   : > { %3919 = sst [smem:[#allocation25_spill]] %s3360_s29  ;;  %s44_s30 = ssub.s32 %s3192_s21, %s3360_s29 }
  0x39   : > { %p45_p1 = scmp.eq.s32.totalorder %s44_s30, 0  ;;  %p54_p3 = scmp.ne.s32.totalorder %s3188_s20, %s3184_s19 }
  0x3a   : > { %p55_p4 = scmp.eq.s32.totalorder %s3192_s21, 0  ;;  %p60_p10 = scmp.ne.s32.totalorder %s3184_s19, %s3180_s18 }
  0x3b   : > { %s3371_s17 = scalar_select %p45_p1, %s3188_s20, %s47_s16  }
  0x3c   : > { %2760 = dma.hbm_to_vmem [thread:$0]  (!%p3336_p6), %s3918_s7, 32, %s450_s27, [#allocation12]  }
  0x3d   : > { %3920 = sst [smem:[#allocation26_spill]] %s3371_s17  ;;  %p56_p11 = por %p55_p4, %p54_p3 }
  0x3e   : > { %p3921_p12 = scmp.eq.s32.totalorder %s3322_s24, 0  ;;  %p372_p0 = scmp.eq.s32.totalorder %s3322_s24, 1 }
  0x3f   : > { %p378_p2 = scmp.eq.s32.totalorder %s2432_s23, 1  ;;  %p2785_p5 = scmp.lt.s32.totalorder %s3192_s21, 2 }
  0x40   : > { %p3375_p13 = por %p3921_p12, %p60_p10  ;;  %s3382_s27 = sand.u32 1, %s3188_s20  }
  0x41   : > { %p3384_p8 = por %p372_p0, %p54_p3  ;;  %p3388_p9 = por %p378_p2, %p60_p10 }
  0x42   : > { %s3922_s22 = scalar_select %p3375_p13, 1, 0 }
  0x43   : > { %s3923_s26 = scalar_select %p3384_p8, 1, 0 }
  0x44   : > { %s3925_s30 = scalar_select %p3388_p9, 1, 0 }
  0x45   : > { %3924 = sst [smem:[#allocation27_spill]] %s3923_s26  ;;  %p3392_p1 = pnand %p2785_p5, %p56_p11 }
  0x46   : > { %3926 = sst [smem:[#allocation28_spill]] %s3925_s30  ;;  %s514_s2 = sand.u32 1, %s3192_s21  }
  0x47   : > { %s3927_s16 = scalar_select %p3392_p1, 1, 0 }
  0x48   : > { %s2441_s7 = sshll.u32 %s3192_s21, 4  ;;  %s3928_s4 = sld [smem:[#allocation32_spill]] }
  0x49   : > { %s517_s29 = scalar_lea.vmem [#allocation8], %s3382_s27  ;;  %s3407_s15 = scalar_lea.hbm %s3869_s5, %s2441_s7 }
  0x4a   : > { %s524_s18 = sshll.u32 %s517_s29, 4  ;;  %s3409_s26 = scalar_lea.sflag [#allocation9], %s514_s2  ;;  %s525_s18 = int_to_ptr.vmem [resolvable:$true] %s524_s18 }
  0x4b   : > { %p3415_p4 = pneg %p3392_p1 }
  0x4d   : > { %s3929_s17 = scalar_select %p3415_p4, 1, 0 }
  0x4e   : > { %s3401_s20 = scalar_lea.hbm %s3928_s4, %s2441_s7  ;;  %s2955_s13 = scalar_lea.hbm %s3928_s4, 32 }
  0x4f   : > { %s2950_s12 = scalar_lea.hbm %s3401_s20, 16  ;;  %p2956_p12 = scmp.lt.s32.totalorder %s3401_s20, %s3928_s4 }
  0x50   : > { %p2951_p3 = scmp.ne.s32.totalorder %s3401_s20, %s2950_s12  ;;  %p2957_p0 = scmp.lt.s32.totalorder %s2955_s13, %s2950_s12 }
  0x52   : > { %p2953_p10 = pnand %p3415_p4, %p2951_p3  ;;  %p2958_p2 = por %p2957_p0, %p2956_p12 }
  0x54   : > { %p2954_p11 = pneg %p2953_p10 }
  0x56   : > { %p2959_p5 = pnand %p2958_p2, %p2954_p11 }
  0x58   : > { %2962 = shalt.err (!%p2959_p5)
}
  0x59   : > { %s2963_s2 = scalar_lea.vmem %s525_s18, 16  ;;  %s3196_s30 = smov [#allocation8]  }
  0x5a   : > { %p2964_p7 = scmp.ne.s32.totalorder %s525_s18, %s2963_s2  ;;  %s2968_s1 = sshll.u32 %s3196_s30, 4  ;;  %s2969_s1 = int_to_ptr.vmem [resolvable:$false] %s2968_s1 }
  0x5b   : > { %s2970_s9 = scalar_lea.vmem %s2969_s1, 32  ;;  %p2971_p3 = scmp.lt.s32.totalorder %s525_s18, %s2969_s1 }
  0x5c   : > { %p2966_p9 = pnand %p2964_p7, %p3415_p4  ;;  %p2972_p10 = scmp.lt.s32.totalorder %s2970_s9, %s2963_s2 }
  0x5e   : > { %p2967_p8 = pneg %p2966_p9  ;;  %p2973_p13 = por %p2972_p10, %p2971_p3 }
  0x60   : > { %p2974_p6 = pnand %p2973_p13, %p2967_p8 }
  0x62   : > { %2977 = shalt.err (!%p2974_p6)
}
  0x63   : > { %2770 = dma.hbm_to_vmem [thread:$0]  (!%p3392_p1), %s3401_s20, 16, %s525_s18, %s3409_s26  }
  0x64   : > { %s3197_s12 = smov [#allocation7]   ;;  %s3198_s29 = smov [#allocation13]  }
  0x65   : > { %s435_s13 = sshll.u32 %s3197_s12, 4  ;;  %s468_s23 = sshll.u32 %s3198_s29, 4  ;;  %s436_s13 = int_to_ptr.vmem [resolvable:$true] %s435_s13  ;;  %s469_s23 = int_to_ptr.vmem [resolvable:$true] %s468_s23 }
  0x66   : > { %s2989_s14 = scalar_lea.vmem %s436_s13, 64  ;;  %p3930_p9 = scmp.ne.s32.totalorder %s3916_s28, 0 }
  0x67   : > { %p2990_p7 = scmp.ne.s32.totalorder %s436_s13, %s2989_s14  ;;  %p2997_p13 = scmp.lt.s32.totalorder %s436_s13, %s436_s13 }
  0x68   : > { %p3931_p11 = pneg %p3930_p9  ;;  %p2998_p6 = scmp.lt.s32.totalorder %s2989_s14, %s2989_s14 }
  0x6a   : > { %p2992_p12 = pnand %p2990_p7, %p3931_p11  ;;  %p2999_p8 = por %p2998_p6, %p2997_p13 }
  0x6c   : > { %p2993_p0 = pneg %p2992_p12 }
  0x6e   : > { %p3000_p2 = pnand %p2999_p8, %p2993_p0 }
  0x70   : > { %3003 = shalt.err (!%p3000_p2)
}
  0x71   : > { %s3932_s3 = sld [smem:[#allocation31_spill]]  ;;  %s3015_s18 = scalar_lea.vmem %s469_s23, 256 }
  0x72   : > { %p3016_p5 = scmp.ne.s32.totalorder %s469_s23, %s3015_s18  ;;  %p3933_p3 = pmov %p3931_p11 }
  0x73   : > { %p3023_p7 = scmp.lt.s32.totalorder %s469_s23, %s469_s23  ;;  %p3024_p11 = scmp.lt.s32.totalorder %s3015_s18, %s3015_s18 }
  0x74   : > { %p3018_p10 = pnand %p3016_p5, %p3933_p3 }
  0x75   : > { %p3025_p12 = por %p3024_p11, %p3023_p7 }
  0x76   : > { %p3019_p1 = pneg %p3018_p10 }
  0x77   : > { %2757 = dma.hbm_to_vmem [thread:$0]  (!%p3930_p9), %s3932_s3, 64, %s436_s13, [#allocation6]  }
  0x78   : > { %p3026_p4 = pnand %p3025_p12, %p3019_p1 }
  0x7a   : > { %3029 = shalt.err (!%p3026_p4)
}
  0x7b   : > { %s3199_s20 = smov 64   ;;  %s3200_s7 = smov 4  }
  0x7c   : > { %2763 = dma.hbm_to_vmem [thread:$0]  (!%p3930_p9), %s3875_s11, 256, %s469_s23, [#allocation12], %s3199_s20, %s3199_s20, %s3200_s7  }
  0x7d   : > { %s2439_s12 = sshll.u32 %s3382_s27, 2  ;;  %s2440_s13 = sshll.u32 %s3192_s21, 6 }
  0x7e   : > { %s3455_s1 = scalar_lea.hbm %s3864_s0, %s2440_s13  ;;  %s492_s9 = scalar_lea.vmem [#allocation2], %s2439_s12 }
  0x7f   : > { %s499_s18 = sshll.u32 %s492_s9, 4  ;;  %s489_s3 = scalar_lea.sflag [#allocation3], %s3382_s27  ;;  %s500_s18 = int_to_ptr.vmem [resolvable:$true] %s499_s18 }
  0x80   : > { %s3030_s4 = scalar_lea.hbm %s3455_s1, 64  ;;  %p3934_p4 = scmp.ne.s32.totalorder %s3929_s17, 0 }
  0x81   : > { %p3031_p1 = scmp.ne.s32.totalorder %s3455_s1, %s3030_s4  ;;  %s3035_s20 = scalar_lea.hbm %s3864_s0, 128 }
  0x82   : > { %p3036_p9 = scmp.lt.s32.totalorder %s3455_s1, %s3864_s0  ;;  %p3037_p6 = scmp.lt.s32.totalorder %s3035_s20, %s3030_s4 }
  0x83   : > { %p3033_p0 = pnand %p3031_p1, %p3934_p4 }
  0x84   : > { %p3038_p8 = por %p3037_p6, %p3036_p9 }
  0x85   : > { %p3034_p13 = pneg %p3033_p0 }
  0x87   : > { %p3039_p2 = pnand %p3038_p8, %p3034_p13 }
  0x89   : > { %3042 = shalt.err (!%p3039_p2)
}
  0x8a   : > { %s3043_s30 = scalar_lea.vmem %s500_s18, 64  ;;  %s3201_s12 = smov [#allocation2]  }
  0x8b   : > { %p3044_p5 = scmp.ne.s32.totalorder %s500_s18, %s3043_s30  ;;  %s3048_s13 = sshll.u32 %s3201_s12, 4  ;;  %s3049_s13 = int_to_ptr.vmem [resolvable:$false] %s3048_s13 }
  0x8c   : > { %s3050_s29 = scalar_lea.vmem %s3049_s13, 128  ;;  %p3051_p7 = scmp.lt.s32.totalorder %s500_s18, %s3049_s13 }
  0x8d   : > { %p3046_p3 = pnand %p3044_p5, %p3934_p4  ;;  %p3052_p11 = scmp.lt.s32.totalorder %s3050_s29, %s3043_s30 }
  0x8f   : > { %p3047_p10 = pneg %p3046_p3  ;;  %p3053_p12 = por %p3052_p11, %p3051_p7 }
  0x91   : > { %p3054_p1 = pnand %p3053_p12, %p3047_p10 }
  0x93   : > { %3057 = shalt.err (!%p3054_p1)
}
  0x94   : > { %p3935_p0 = scmp.ne.s32.totalorder %s3927_s16, 0  ;;  %s534_s4 = scalar_lea.vmem [#allocation10], %s3382_s27 }
  0x95   : > { %s541_s14 = sshll.u32 %s534_s4, 4  ;;  %s3058_s9 = scalar_lea.hbm %s3407_s15, 16  ;;  %s542_s14 = int_to_ptr.vmem [resolvable:$true] %s541_s14 }
  0x96   : > { %2767 = dma.hbm_to_vmem [thread:$0]  (!%p3935_p0), %s3455_s1, 64, %s500_s18, %s489_s3  }
  0x97   : > { %p3059_p13 = scmp.ne.s32.totalorder %s3407_s15, %s3058_s9  ;;  %s3063_s20 = scalar_lea.hbm %s3869_s5, 32 }
  0x98   : > { %p3064_p8 = scmp.lt.s32.totalorder %s3407_s15, %s3869_s5  ;;  %p3065_p2 = scmp.lt.s32.totalorder %s3063_s20, %s3058_s9 }
  0x99   : > { %p3061_p9 = pnand %p3059_p13, %p3934_p4 }
  0x9a   : > { %p3066_p5 = por %p3065_p2, %p3064_p8 }
  0x9b   : > { %p3062_p6 = pneg %p3061_p9 }
  0x9d   : > { %p3067_p3 = pnand %p3066_p5, %p3062_p6 }
  0x9f   : > { %3070 = shalt.err (!%p3067_p3)
}
  0xa0   : > { %s3071_s3 = scalar_lea.vmem %s542_s14, 16  ;;  %s3202_s27 = smov [#allocation10]  }
  0xa1   : > { %p3072_p10 = scmp.ne.s32.totalorder %s542_s14, %s3071_s3  ;;  %s3076_s1 = sshll.u32 %s3202_s27, 4  ;;  %s3077_s1 = int_to_ptr.vmem [resolvable:$false] %s3076_s1 }
  0xa2   : > { %s3078_s18 = scalar_lea.vmem %s3077_s1, 32  ;;  %p3079_p12 = scmp.lt.s32.totalorder %s542_s14, %s3077_s1 }
  0xa3   : > { %p3074_p7 = pnand %p3072_p10, %p3934_p4  ;;  %p3080_p1 = scmp.lt.s32.totalorder %s3078_s18, %s3071_s3 }
  0xa5   : > { %p3075_p11 = pneg %p3074_p7  ;;  %p3081_p13 = por %p3080_p1, %p3079_p12 }
  0xa7   : > { %p3082_p9 = pnand %p3081_p13, %p3075_p11 }
  0xa9   : > { %3085 = shalt.err (!%p3082_p9)
}
  0xaa   : > { %2773 = dma.hbm_to_vmem [thread:$0]  (!%p3935_p0), %s3407_s15, 16, %s542_s14, %s3409_s26  }
  0xab   : > { %p3936_p6 = scmp.ne.s32.totalorder %s3915_s25, 0 }
  0xac   : > { %s3495_s17 = sand.u32 (!%p3936_p6), 1, %s3184_s19   ;;  %p3937_p4 = scmp.ne.s32.totalorder (!%p3936_p6), %s3922_s22, 0 }
  0xad   : > { %550 = sbr.rel (%p3936_p6) target bundleno = 4521 (0x11a9), region = 76  ;;  %s2444_s30 = sshll.u32 (!%p3936_p6), %s3495_s17, 2 }
  0xae   : > { %s553_s12 = scalar_lea.sflag (!%p3936_p6), [#allocation3], %s3495_s17  ;;  %s556_s13 = scalar_lea.vmem (!%p3936_p6), [#allocation2], %s2444_s30 }
  0xb2   : > { %3155 = dma.done.wait (%p3937_p4), %s553_s12, 64  }
  0xb3   : > { %3157 = vsyncadd (%p3937_p4), %s553_s12, 4294967232  ;;  %p3938_p8 = scmp.eq.s32.totalorder %s3322_s24, 0 }
  0xb5   : > { %3159 = dma.done.wait (%p3938_p8), [#allocation6], 128   ;;  %p3939_p0 = pmov %p3938_p8 }
  0xb6   : > { %s569_s15 = sand.u32 1, %s3322_s24   ;;  %s572_s26 = scalar_lea.vmem [#allocation8], %s3495_s17 }
  0xb7   : > { %3161 = vsyncadd (%p3939_p0), [#allocation6], 4294967168  ;;  %s570_s25 = scalar_lea.sflag [#allocation9], %s569_s15 }
  0xb8   : > { %3163 = dma.done.wait (%p3937_p4), %s570_s25, 32  }
  0xb9   : > { %3165 = vsyncadd (%p3937_p4), %s570_s25, 4294967264  ;;  %s580_s16 = scalar_lea.vmem [#allocation10], %s3495_s17  ;;  %p3940_p2 = pmov %p3939_p0 }
  0xba   : > { %p3941_p5 = pmov %p3939_p0 }
  0xbb   : > { %3167 = dma.done.wait (%p3940_p2), [#allocation12], 288  }
  0xbc   : > { %3169 = vsyncadd (%p3941_p5), [#allocation12], 4294967008  ;;  %vm684_vm0 = vcmask 261120   ;;  %v659_v0 = vld [vmem:[%s556_s13] sm:$0xf]  ;;  %v2845_v8 = vld [vmem:[%s3870_s6 + $0x8] sm:$0xff]   ;;  %v699_v14 = vlaneseq }
  0xbd   : > { %v3518_v1 = vunpack.c.l.bf16 %v659_v0  ;;  %v3203_v9 = vmov 0.0   ;;  %vm3204_vm1 = vmmov 0   ;;  %v2846_v10 = vld [vmem:[%s3870_s6] sm:$0xff]   ;;  %v2455_v26 = vld [vmem:[#allocation11] ss:$0 sm:$0xff]  ;;  %s3205_s23 = smov 96  }
  0xbe   : > { %2569 = vmatprep.subr.bf16.mxu0 %v3203_v9  ;;  %2573 = vmatprep.mubr.msk.bf16.mxu0 %vm3204_vm1, %v3203_v9  ;;  %v3538_v15 = vshrl.u32 %v699_v14, 7  ;;  %v3544_v17 = vld [vmem:[%s3874_s10] sm:$0x3f]  ;;  %s3206_s20 = smov 112   ;;  %s3207_s7 = smov 120   ;;  %vm822_vm2 = vcmask 1043456  }
  0xbf   : > { %v685_v2 = vsel %vm684_vm0, %v3518_v1, 0.0  ;;  %2570 = vmatpush3.bf16.msra.mxu0 %v2845_v8  ;;  %2583 = vmatprep.subr.bf16.mxu1 %v3203_v9  ;;  %s3208_s2 = smov 104   ;;  %vm818_vm3 = vcmask 64512   ;;  %v663_v49 = vld [vmem:[#allocation5] sm:$0xf]  ;;  %s3209_s3 = smov 56  }
  0xc0   : > { %686 = vadd.xlane.f32.xlu0 %v685_v2  ;;  %2571 = vmatprep.subr.bf16.mxu0 %v3203_v9  ;;  %v701_v16 = vsub.s32 0, %v3538_v15  ;;  %v706_v18 = vsub.s32 1, %v3538_v15  ;;  %v664_v50 = vunpack.c.l.bf16 %v663_v49  ;;  %v2453_v51 = vld [vmem:[%s572_s26] ss:$0 sm:$0xff]  ;;  %s3210_s27 = smov 64   ;;  %s3211_s1 = smov 48  }
  0xc1   : > { %2585 = vmatprep.mubr.msk.bf16.mxu1 %vm3204_vm1, %v3203_v9  ;;  %s3212_s18 = smov 40   ;;  %s3213_s30 = smov 8   ;;  %vm1268_vm4 = vcmask 130048   ;;  %vm1270_vm5 = vcmask 195584   ;;  %vm1569_vm6 = vcmask 80896   ;;  %vm1588_vm7 = vcmask 1044480  }
  0xc2   : > { %v702_v19 = vrot.slane %v3544_v17, %v701_v16  ;;  %v707_v22 = vrot.slane %v3544_v17, %v706_v18  ;;  %v672_v52 = vadd.f32 %v2453_v51, %v664_v50  ;;  %s3214_s26 = smov 16   ;;  %s3215_s22 = smov 24   ;;  %vm2164_vm8 = vcmask 523264  }
  0xc3   : > { %2572 = vmatpush3.bf16.msra.mxu0 %v2846_v10  ;;  %s3942_s14 = sld [smem:[#allocation34_spill]]  ;;  %p653_p3 = scmp.lt.s32.totalorder %s3322_s24, 1 }
  0xc4   : > { %2577 = vmatprep.subr.bf16.mxu0 %v3203_v9  ;;  %s3943_s15 = sld [smem:[#allocation29_spill]]  ;;  %s2509_s9 = sshll.u32 %s3322_s24, 7 }
  0xc5   : > { %s3947_s4 = sld [smem:[#allocation27_spill]]  ;;  %s3219_s12 = smov [#allocation15]  }
  0xc6   : > { %s3090_s13 = sshll.u32 %s3219_s12, 4  ;;  %s3091_s13 = int_to_ptr.vmem [resolvable:$false] %s3090_s13 }
  0xcb   : > { %p3949_p7 = scmp.ne.s32.totalorder %s3947_s4, 0 }
 0x149   : > { %v687_v3 = vpop.xlane.xlu0 %686 }
 0x14a   : > { %v689_v4 = vmul.f32 0.03125, %v687_v3 }
 0x14c   : > { %v690_v5 = vsub.f32 %v3518_v1, %v689_v4 }
 0x14e   : > { %v691_v6 = vmul.f32 %v690_v5, %v690_v5 }
 0x150   : > { %v692_v7 = vsel %vm684_vm0, %v691_v6, 0.0 }
 0x151   : > { %693 = vadd.xlane.f32.xlu0 %v692_v7 }
 0x1da   : > { %v694_v11 = vpop.xlane.xlu0 %693 }
 0x1db   : > { %v695_v12 = vmul.f32 0.03125, %v694_v11 }
 0x1dd   : > { %v696_v13 = vadd.f32 1e-06, %v695_v12 }
 0x1df   : > { %2860 = vrsqrt.f32 %v696_v13 }
 0x1ec   : > { %v2861_v20 = vpop.eup %2860 }
 0x1ed   : > { %v698_v21 = vmul.f32 %v2861_v20, %v690_v5 }
 0x1ef   : > { %v703_v23 = vmul.f32 %v702_v19, %v698_v21 }
 0x1f1   : > { %v708_v24 = vadd.f32 %v707_v22, %v703_v23 }
 0x1f3   : > { %v709_v25 = vpack.c.bf16 %v708_v24, %v708_v24 }
 0x1f5   : > { %2574 = vmatmul.mubr.msk.bf16.vlgmr.msra.gmra.mxu0 %vm684_vm0, %v709_v25 }
 0x1f6   : > { %2579 = vmatprep.mubr.msk.bf16.mxu0 %vm3204_vm1, %v3203_v9 }
 0x2b5   : > { %v773_v27 = vpop.f32.mrf.mxu0 }
 0x2b6   : > { %v774_v28 = vadd.f32 %v2455_v26, %v773_v27 }
 0x2b7   : > { %v2575_v29 = vpop.f32.mrf.mxu0 }
 0x2b8   : > { %v3552_v30 = vpack.c.bf16 %v774_v28, %v774_v28  ;;  %781 = vrot.lane.b32.xlu1 %v774_v28, %s3205_s23 }
 0x2b9   : > { %v776_v31 = vpop.f32.mrf.mxu0 }
 0x2ba   : > { %1037 = vrot.lane.b32.xlu0 %v3552_v30, %s3206_s20 }
 0x2bb   : > { %v2576_v32 = vpop.f32.mrf.mxu0 }
 0x2bc   : > { %927 = vrot.lane.b32.xlu1 %v3552_v30, %s3207_s7 }
 0x2be   : > { %1145 = vrot.lane.b32.xlu0 %v3552_v30, %s3208_s2 }
 0x32a   : > { %v782_v33 = vpop.permute.xlu1 %781 }
 0x32b   : > { %784 = vxpose.xlu1.b32.start.end [1/1] (short) (narrow) %v782_v33, 32 }
 0x32c   : > { %v1038_v47 = vpop.permute.xlu0 %1037 }
 0x32e   : > { %v928_v34 = vpop.permute.xlu1 %927 }
 0x330   : > { %v1146_v48 = vpop.permute.xlu0 %1145 }
 0x3a7   : > { %v800_v35 = vpop.trf.xlu1 }
 0x3ab   : > { %v801_v36 = vpop.trf.xlu1 }
 0x3ac   : > { %v816_v37 = vpack.c.bf16 %v801_v36, %v800_v35 }
 0x3ae   : > { %v824_v38 = vsel %vm822_vm2, %v816_v37, 0  ;;  %v930_v39 = vrot.slane %v816_v37, 4 }
 0x3af   : > { %2578 = vmatpush3.bf16.msra.mxu0 %v824_v38  ;;  %v802_v40 = vpop.trf.xlu1 }
 0x3b0   : > { %2589 = vmatprep.subr.bf16.mxu0 %v3203_v9  ;;  %v935_v41 = vsel %vm822_vm2, %v930_v39, 0 }
 0x3b2   : > { %2580 = vmatmul.mubr.msk.bf16.vlgmr.msra.gmra.mxu0 %vm818_vm3, %v3552_v30 }
 0x3b3   : > { %2590 = vmatpush3.bf16.msra.mxu0 %v935_v41  ;;  %2591 = vmatprep.mubr.msk.bf16.mxu0 %vm3204_vm1, %v3203_v9  ;;  %v803_v42 = vpop.trf.xlu1 }
 0x3b4   : > { %v817_v43 = vpack.c.bf16 %v803_v42, %v802_v40  ;;  %2601 = vmatprep.subr.bf16.mxu0 %v3203_v9 }
 0x3b6   : > { %v1043_v44 = vsel %vm822_vm2, %v817_v43, 0  ;;  %v1148_v45 = vrot.slane %v817_v43, 4 }
 0x3b8   : > { %v1153_v46 = vsel %vm822_vm2, %v1148_v45, 0 }
 0x3ba   : > { %2592 = vmatmul.mubr.msk.bf16.vlgmr.msra.gmra.mxu0 %vm818_vm3, %v928_v34 }
 0x3bb   : > { %2602 = vmatpush3.bf16.msra.mxu0 %v1043_v44  ;;  %2603 = vmatprep.mubr.msk.bf16.mxu0 %vm3204_vm1, %v3203_v9 }
 0x3bc   : > { %2613 = vmatprep.subr.bf16.mxu0 %v3203_v9 }
 0x3c2   : > { %2604 = vmatmul.mubr.msk.bf16.vlgmr.msra.gmra.mxu0 %vm818_vm3, %v1038_v47 }
 0x3c3   : > { %2614 = vmatpush3.bf16.msra.mxu0 %v1153_v46  ;;  %2615 = vmatprep.mubr.msk.bf16.mxu0 %vm3204_vm1, %v3203_v9 }
 0x3c4   : > { %2625 = vmatprep.subr.bf16.mxu0 %v3203_v9 }
 0x3ca   : > { %2616 = vmatmul.mubr.msk.bf16.vlgmr.msra.gmra.mxu0 %vm818_vm3, %v1146_v48 }
 0x3cb   : > { %2629 = vmatprep.mubr.msk.bf16.mxu0 %vm3204_vm1, %v3203_v9 }
 0x472   : > { %v860_v53 = vpop.f32.mrf.mxu0 }
 0x473   : > { %v861_v54 = vadd.f32 %v860_v53, %v672_v52 }
 0x474   : > { %v2581_v55 = vpop.f32.mrf.mxu0 }
 0x475   : > { %v866_v56 = vsel %vm818_vm3, %v861_v54, -inf }
 0x476   : > { %867 = vmax.xlane.f32.xlu0 %v866_v56  ;;  %v863_v57 = vpop.f32.mrf.mxu0 }
 0x478   : > { %v2582_v58 = vpop.f32.mrf.mxu0 }
 0x47a   : > { %v971_v59 = vpop.f32.mrf.mxu0 }
 0x47b   : > { %v972_v60 = vadd.f32 %v971_v59, %v672_v52 }
 0x47c   : > { %v2593_v61 = vpop.f32.mrf.mxu0 }
 0x47d   : > { %v977_v62 = vsel %vm818_vm3, %v972_v60, -inf }
 0x47e   : > { %978 = vmax.xlane.f32.xlu1 %v977_v62  ;;  %v974_v63 = vpop.f32.mrf.mxu0 }
 0x480   : > { %v2594_v0 = vpop.f32.mrf.mxu0 }
 0x482   : > { %v1079_v2 = vpop.f32.mrf.mxu0 }
 0x483   : > { %v1080_v3 = vadd.f32 %v1079_v2, %v672_v52 }
 0x484   : > { %v2605_v4 = vpop.f32.mrf.mxu0 }
 0x485   : > { %v1085_v5 = vsel %vm818_vm3, %v1080_v3, -inf }
 0x486   : > { %1086 = vmax.xlane.f32.xlu0 %v1085_v5  ;;  %v1082_v6 = vpop.f32.mrf.mxu0 }
 0x487   : > { %v2847_v6 = vld [vmem:[%s3872_s8 + $0x8] sm:$0xff]  }
 0x488   : > { %v2606_v7 = vpop.f32.mrf.mxu0  ;;  %2626 = vmatpush3.bf16.msra.mxu0 %v2847_v6 }
 0x489   : > { %2627 = vmatprep.subr.bf16.mxu0 %v3203_v9  ;;  %v2848_v7 = vld [vmem:[%s3872_s8] sm:$0xff]  }
 0x48a   : > { %v1189_v8 = vpop.f32.mrf.mxu0 }
 0x48b   : > { %v1190_v10 = vadd.f32 %v1189_v8, %v672_v52 }
 0x48c   : > { %v2617_v11 = vpop.f32.mrf.mxu0  ;;  %2628 = vmatpush3.bf16.msra.mxu0 %v2848_v7 }
 0x48d   : > { %v1195_v12 = vsel %vm818_vm3, %v1190_v10, -inf  ;;  %2641 = vmatprep.subr.bf16.mxu0 %v3203_v9 }
 0x48e   : > { %1196 = vmax.xlane.f32.xlu0 %v1195_v12  ;;  %v1192_v13 = vpop.f32.mrf.mxu0 }
 0x48f   : > { %989 = vrot.lane.b32.xlu1 %v3552_v30, %s3209_s3 }
 0x490   : > { %v2618_v14 = vpop.f32.mrf.mxu0 }
 0x4a4   : > { %879 = vrot.lane.b32.xlu0 %v3552_v30, %s3210_s27  ;;  %s3944_s27 = sld [smem:[#allocation36_spill]] }
 0x4ff   : > { %v868_v16 = vpop.xlane.xlu0 %867 }
 0x500   : > { %v869_v18 = vsub.f32 %v861_v54, %v868_v16 }
 0x502   : > { %v870_v19 = vmul.f32 1.442695, %v869_v18 }
 0x504   : > { %2862 = vpow2.f32 %v870_v19 }
 0x507   : > { %v979_v20 = vpop.xlane.xlu1 %978 }
 0x508   : > { %v980_v21 = vsub.f32 %v972_v60, %v979_v20 }
 0x50a   : > { %v981_v22 = vmul.f32 1.442695, %v980_v21 }
 0x50b   : > { %v990_v44 = vpop.permute.xlu1 %989 }
 0x50c   : > { %2864 = vpow2.f32 %v981_v22  ;;  %v995_v46 = vsel %vm822_vm2, %v990_v44, 0 }
 0x50f   : > { %v1087_v25 = vpop.xlane.xlu0 %1086 }
 0x510   : > { %v1088_v32 = vsub.f32 %v1080_v3, %v1087_v25 }
 0x511   : > { %v2863_v23 = vpop.eup %2862 }
 0x512   : > { %v872_v24 = vsel %vm818_vm3, %v2863_v23, 0.0  ;;  %v1089_v33 = vmul.f32 1.442695, %v1088_v32 }
 0x513   : > { %873 = vadd.xlane.f32.xlu0 %v872_v24 }
 0x514   : > { %2866 = vpow2.f32 %v1089_v33 }
 0x517   : > { %v1197_v26 = vpop.xlane.xlu0 %1196 }
 0x518   : > { %v1198_v34 = vsub.f32 %v1190_v10, %v1197_v26  ;;  %v2467_v26 = vld [vmem:[%s3942_s14] ss:$0 sm:$0xff] }
 0x519   : > { %v2865_v27 = vpop.eup %2864 }
 0x51a   : > { %v983_v28 = vsel %vm818_vm3, %v2865_v27, 0.0  ;;  %v1199_v35 = vmul.f32 1.442695, %v1198_v34 }
 0x51b   : > { %984 = vadd.xlane.f32.xlu0 %v983_v28  ;;  %v880_v29 = vpop.permute.xlu0 %879 }
 0x51c   : > { %v885_v31 = vsel %vm822_vm2, %v880_v29, 0  ;;  %2868 = vpow2.f32 %v1199_v35  ;;  %v2849_v35 = vld [vmem:[%s3870_s6 + $0x18] sm:$0xff]  }
 0x51d   : > { %2584 = vmatpush3.bf16.msra.mxu1 %v885_v31 }
 0x51e   : > { %2595 = vmatprep.subr.bf16.mxu1 %v3203_v9 }
 0x521   : > { %v2867_v36 = vpop.eup %2866 }
 0x522   : > { %v1091_v37 = vsel %vm818_vm3, %v2867_v36, 0.0 }
 0x529   : > { %v2869_v38 = vpop.eup %2868 }
 0x52a   : > { %v1201_v39 = vsel %vm818_vm3, %v2869_v38, 0.0 }
 0x531   : > { %1097 = vrot.lane.b32.xlu0 %v3552_v30, %s3211_s1  ;;  %s654_s1 = scalar_select %p653_p3, %s3322_s24, 1 }
 0x550   : > { %1092 = vadd.xlane.f32.xlu0 %v1091_v37 }
 0x554   : > { %1202 = vadd.xlane.f32.xlu0 %v1201_v39 }
 0x56a   : > { %1207 = vrot.lane.b32.xlu0 %v3552_v30, %s3212_s18  ;;  %s2513_s18 = sshll.u32 %s654_s1, 3  ;;  %s2217_s1 = scalar_lea.sflag [#allocation16], %s3495_s17 }
 0x56b   : > { %s657_s25 = scalar_lea.vmem %s3943_s15, %s2513_s18  ;;  %s3092_s15 = scalar_lea.vmem %s3091_s13, 256 }
 0x59c   : > { %v874_v40 = vpop.xlane.xlu0 %873 }
 0x59d   : > { %2870 = vrcp.f32 %v874_v40 }
 0x5a4   : > { %v985_v41 = vpop.xlane.xlu0 %984 }
 0x5a5   : > { %2872 = vrcp.f32 %v985_v41 }
 0x5a8   : > { %v1098_v48 = vpop.permute.xlu0 %1097 }
 0x5a9   : > { %v1103_v50 = vsel %vm822_vm2, %v1098_v48, 0  ;;  %v1353_v48 = vsub.s32 3, %v3538_v15 }
 0x5aa   : > { %v2871_v42 = vpop.eup %2870 }
 0x5ab   : > { %v876_v43 = vmul.f32 %v2871_v42, %v2863_v23  ;;  %v2479_v42 = vld [vmem:[#allocation11 + $0x1] ss:$0 sm:$0xff] }
 0x5ad   : > { %v877_v45 = vpack.c.bf16 %v876_v43, %v876_v43 }
 0x5af   : > { %2586 = vmatmul.mubr.msk.bf16.vlgmr.msra.gmra.mxu1 %vm818_vm3, %v877_v45 }
 0x5b0   : > { %2596 = vmatpush3.bf16.msra.mxu1 %v995_v46  ;;  %2597 = vmatprep.mubr.msk.bf16.mxu1 %vm3204_vm1, %v3203_v9 }
 0x5b1   : > { %2607 = vmatprep.subr.bf16.mxu1 %v3203_v9 }
 0x5b2   : > { %v2873_v47 = vpop.eup %2872 }
 0x5b3   : > { %v987_v30 = vmul.f32 %v2873_v47, %v2865_v27  ;;  %v2851_v47 = vld [vmem:[%s657_s25] sm:$0x1f]  }
 0x5b5   : > { %v988_v49 = vpack.c.bf16 %v987_v30, %v987_v30  ;;  %v1348_v30 = vsub.s32 2, %v3538_v15 }
 0x5b7   : > { %2598 = vmatmul.mubr.msk.bf16.vlgmr.msra.gmra.mxu1 %vm818_vm3, %v988_v49  ;;  %v1349_v49 = vrot.slane %v3544_v17, %v1348_v30 }
 0x5b8   : > { %2608 = vmatpush3.bf16.msra.mxu1 %v1103_v50  ;;  %2609 = vmatprep.mubr.msk.bf16.mxu1 %vm3204_vm1, %v3203_v9 }
 0x5b9   : > { %2619 = vmatprep.subr.bf16.mxu1 %v3203_v9 }
 0x5d9   : > { %v1093_v51 = vpop.xlane.xlu0 %1092 }
 0x5da   : > { %2874 = vrcp.f32 %v1093_v51 }
 0x5dd   : > { %v1203_v52 = vpop.xlane.xlu0 %1202 }
 0x5de   : > { %2876 = vrcp.f32 %v1203_v52  ;;  %v1354_v52 = vrot.slane %v3544_v17, %v1353_v48 }
 0x5e1   : > { %v1208_v55 = vpop.permute.xlu0 %1207 }
 0x5e2   : > { %v1213_v58 = vsel %vm822_vm2, %v1208_v55, 0 }
 0x5e7   : > { %v2875_v53 = vpop.eup %2874 }
 0x5e8   : > { %v1095_v54 = vmul.f32 %v2875_v53, %v2867_v36  ;;  %v2850_v36 = vld [vmem:[%s3870_s6 + $0x10] sm:$0xff]  }
 0x5ea   : > { %v1096_v56 = vpack.c.bf16 %v1095_v54, %v1095_v54 }
 0x5eb   : > { %v2877_v57 = vpop.eup %2876 }
 0x5ec   : > { %2610 = vmatmul.mubr.msk.bf16.vlgmr.msra.gmra.mxu1 %vm818_vm3, %v1096_v56  ;;  %v1205_v59 = vmul.f32 %v2877_v57, %v2869_v38 }
 0x5ed   : > { %2620 = vmatpush3.bf16.msra.mxu1 %v1213_v58  ;;  %2621 = vmatprep.mubr.msk.bf16.mxu1 %vm3204_vm1, %v3203_v9 }
 0x5ee   : > { %2633 = vmatprep.subr.bf16.mxu1 %v3203_v9  ;;  %v1206_v60 = vpack.c.bf16 %v1205_v59, %v1205_v59 }
 0x5f4   : > { %2622 = vmatmul.mubr.msk.bf16.vlgmr.msra.gmra.mxu1 %vm818_vm3, %v1206_v60 }
 0x5f5   : > { %2637 = vmatprep.mubr.msk.bf16.mxu1 %vm3204_vm1, %v3203_v9  ;;  %2634 = vmatpush3.bf16.msra.mxu1 %v2849_v35 }
 0x5f6   : > { %2635 = vmatprep.subr.bf16.mxu1 %v3203_v9 }
 0x5f9   : > { %2636 = vmatpush3.bf16.msra.mxu1 %v2850_v36 }
 0x5fa   : > { %2649 = vmatprep.subr.bf16.mxu1 %v3203_v9 }
 0x66f   : > { %v921_v61 = vpop.f32.mrf.mxu1 }
 0x671   : > { %v2587_v62 = vpop.f32.mrf.mxu1 }
 0x673   : > { %v924_v63 = vpop.f32.mrf.mxu1 }
 0x675   : > { %v2588_v0 = vpop.f32.mrf.mxu1 }
 0x677   : > { %v1031_v2 = vpop.f32.mrf.mxu1 }
 0x678   : > { %1256 = vrot.lane.b32.xlu1 %v1031_v2, %s3213_s30 }
 0x679   : > { %v2599_v3 = vpop.f32.mrf.mxu1 }
 0x67b   : > { %v1034_v4 = vpop.f32.mrf.mxu1 }
 0x67d   : > { %v2600_v5 = vpop.f32.mrf.mxu1 }
 0x6ac   : > { %v1139_v8 = vpop.f32.mrf.mxu1 }
 0x6ad   : > { %1260 = vrot.lane.b32.xlu0 %v1139_v8, %s3214_s26 }
 0x6ae   : > { %v2611_v10 = vpop.f32.mrf.mxu1 }
 0x6b0   : > { %v1142_v11 = vpop.f32.mrf.mxu1 }
 0x6b2   : > { %v2612_v12 = vpop.f32.mrf.mxu1 }
 0x6b4   : > { %v1249_v13 = vpop.f32.mrf.mxu1 }
 0x6b5   : > { %1264 = vrot.lane.b32.xlu1 %v1249_v13, %s3215_s22 }
 0x6b6   : > { %v2623_v14 = vpop.f32.mrf.mxu1 }
 0x6b8   : > { %v1252_v16 = vpop.f32.mrf.mxu1 }
 0x6ba   : > { %v2624_v18 = vpop.f32.mrf.mxu1 }
 0x6ea   : > { %v1257_v19 = vpop.permute.xlu1 %1256 }
 0x6eb   : > { %v1267_v21 = vsel %vm818_vm3, %v921_v61, %v1257_v19 }
 0x71f   : > { %v1261_v20 = vpop.permute.xlu0 %1260 }
 0x720   : > { %v1269_v22 = vsel %vm1268_vm4, %v1267_v21, %v1261_v20 }
 0x727   : > { %v1265_v23 = vpop.permute.xlu1 %1264 }
 0x728   : > { %v1271_v24 = vsel %vm1270_vm5, %v1269_v22, %v1265_v23 }
 0x729   : > { %v1272_v25 = vpack.c.bf16 %v1271_v24, %v1271_v24 }
 0x72b   : > { %2630 = vmatmul.mubr.msk.bf16.vlgmr.msra.gmra.mxu0 %vm684_vm0, %v1272_v25  ;;  %v673_v25 = vld [vmem:[#allocation7] sm:$0xf] }
 0x72c   : > { %2645 = vmatprep.mubr.msk.bf16.mxu0 %vm3204_vm1, %v3203_v9 }
 0x7eb   : > { %v1326_v27 = vpop.f32.mrf.mxu0 }
 0x7ec   : > { %v1327_v28 = vadd.f32 %v2467_v26, %v1326_v27  ;;  %v674_v26 = vunpack.c.l.bf16 %v673_v25  ;;  %v2454_v27 = vld [vmem:[%s580_s16] ss:$0 sm:$0xff]  ;;  %s3216_s16 = smov 88  }
 0x7ed   : > { %v2631_v29 = vpop.f32.mrf.mxu0 }
 0x7ee   : > { %v3637_v31 = vadd.f32 %v1327_v28, %v3518_v1  ;;  %v682_v28 = vadd.f32 %v2454_v27, %v674_v26 }
 0x7ef   : > { %v1329_v32 = vpop.f32.mrf.mxu0 }
 0x7f0   : > { %v1333_v33 = vsel %vm684_vm0, %v3637_v31, 0.0 }
 0x7f1   : > { %1334 = vadd.xlane.f32.xlu0 %v1333_v33  ;;  %v2632_v34 = vpop.f32.mrf.mxu0 }
 0x807   : > { %1435 = vrot.lane.b32.xlu0 %v2849_v35, %s3205_s23 }
 0x80b   : > { %1440 = vrot.lane.b32.xlu0 %v2479_v42, %s3205_s23 }
 0x87a   : > { %v1335_v1 = vpop.xlane.xlu0 %1334 }
 0x87b   : > { %v1336_v37 = vmul.f32 0.03125, %v1335_v1 }
 0x87d   : > { %v1337_v38 = vsub.f32 %v3637_v31, %v1336_v37 }
 0x87e   : > { %v1436_v41 = vpop.permute.xlu0 %1435 }
 0x87f   : > { %v1338_v39 = vmul.f32 %v1337_v38, %v1337_v38  ;;  %2642 = vmatpush3.bf16.msra.mxu0 %v1436_v41 }
 0x880   : > { %2643 = vmatprep.subr.bf16.mxu0 %v3203_v9 }
 0x881   : > { %v1339_v40 = vsel %vm684_vm0, %v1338_v39, 0.0 }
 0x882   : > { %1340 = vadd.xlane.f32.xlu1 %v1339_v40  ;;  %v1441_v57 = vpop.permute.xlu0 %1440 }
 0x893   : > { %1433 = vrot.lane.b32.xlu1 %v2850_v36, %s3205_s23 }
 0x90b   : > { %v1341_v43 = vpop.xlane.xlu1 %1340 }
 0x90c   : > { %v1342_v44 = vmul.f32 0.03125, %v1341_v43 }
 0x90e   : > { %v1343_v45 = vadd.f32 1e-06, %v1342_v44 }
 0x90f   : > { %v1434_v46 = vpop.permute.xlu1 %1433 }
 0x910   : > { %2878 = vrsqrt.f32 %v1343_v45  ;;  %2644 = vmatpush3.bf16.msra.mxu0 %v1434_v46 }
 0x911   : > { %2655 = vmatprep.subr.bf16.mxu0 %v3203_v9 }
 0x913   : > { %2646 = vmatmul.mubr.msk.bf16.vlgmr.msra.gmra.mxu0 %vm684_vm0, %v2851_v47 }
 0x914   : > { %2657 = vmatprep.mubr.msk.bf16.mxu0 %vm3204_vm1, %v3203_v9 }
 0x91d   : > { %v2879_v50 = vpop.eup %2878 }
 0x91e   : > { %v1345_v51 = vmul.f32 %v2879_v50, %v1337_v38 }
 0x920   : > { %v1350_v53 = vmul.f32 %v1349_v49, %v1345_v51 }
 0x922   : > { %v1355_v54 = vadd.f32 %v1354_v52, %v1350_v53 }
 0x924   : > { %v1356_v55 = vpack.c.bf16 %v1355_v54, %v1355_v54 }
 0x926   : > { %2638 = vmatmul.mubr.msk.bf16.vlgmr.msra.gmra.mxu1 %vm684_vm0, %v1356_v55 }
 0x927   : > { %2651 = vmatprep.mubr.msk.bf16.mxu1 %vm3204_vm1, %v3203_v9 }
 0x9d3   : > { %v1480_v56 = vpop.f32.mrf.mxu0 }
 0x9d4   : > { %v1481_v59 = vadd.f32 %v1480_v56, %v1441_v57 }
 0x9d5   : > { %v2647_v58 = vpop.f32.mrf.mxu0 }
 0x9d7   : > { %v1483_v60 = vpop.f32.mrf.mxu0 }
 0x9d8   : > { %v1484_v61 = vadd.f32 %v1483_v60, %v1441_v57 }
 0x9d9   : > { %v2648_v62 = vpop.f32.mrf.mxu0 }
 0x9da   : > { %v3671_v63 = vpack.c.bf16 %v1484_v61, %v1481_v59 }
 0x9e6   : > { %v1422_v0 = vpop.f32.mrf.mxu1 }
 0x9e7   : > { %v1423_v2 = vadd.f32 %v2479_v42, %v1422_v0 }
 0x9e8   : > { %v2639_v3 = vpop.f32.mrf.mxu1 }
 0x9e9   : > { %v1487_v4 = vpack.c.bf16 %v1423_v2, %v1423_v2 }
 0x9ea   : > { %v1425_v5 = vpop.f32.mrf.mxu1 }
 0x9eb   : > { %1743 = vrot.lane.b32.xlu0 %v1487_v4, %s3206_s20  ;;  %1633 = vrot.lane.b32.xlu1 %v1487_v4, %s3207_s7  ;;  %s3218_s20 = smov 72   ;;  %s2449_s7 = sshll.u32 %s3495_s17, 3 }
 0x9ec   : > { %v2640_v6 = vpop.f32.mrf.mxu1 }
 0x9ef   : > { %1851 = vrot.lane.b32.xlu0 %v1487_v4, %s3208_s2  ;;  %s3716_s2 = scalar_lea.vmem [#allocation15], %s2449_s7 }
 0x9f0   : > { %s2243_s3 = sshll.u32 %s3716_s2, 4  ;;  %s2244_s3 = int_to_ptr.vmem [resolvable:$true] %s2243_s3 }
 0x9f1   : > { %s3086_s18 = scalar_lea.vmem %s2244_s3, 128  ;;  %p3093_p1 = scmp.lt.s32.totalorder %s2244_s3, %s3091_s13 }
 0x9f2   : > { %p3087_p10 = scmp.ne.s32.totalorder %s2244_s3, %s3086_s18  ;;  %p3094_p13 = scmp.lt.s32.totalorder %s3092_s15, %s3086_s18 }
 0x9f4   : > { %p3088_p11 = pnand %p3087_p10, %p3949_p7  ;;  %p3095_p9 = por %p3094_p13, %p3093_p1 }
 0x9f6   : > { %p3089_p12 = pneg %p3088_p11 }
 0x9f8   : > { %p3096_p6 = pnand %p3095_p9, %p3089_p12 }
 0xa14   : > { %1488 = vxpose.xlu1.b32.start [1/2] (short) (narrow) %v1481_v59, 32 }
 0xa18   : > { %1489 = vxpose.xlu1.b32.end [2/2] (short) (narrow) %v1484_v61, 32 }
 0xa5d   : > { %v1634_v7 = vpop.permute.xlu1 %1633  ;;  %v1744_v23 = vpop.permute.xlu0 %1743 }
 0xa61   : > { %v1852_v24 = vpop.permute.xlu0 %1851 }
 0xa90   : > { %v1504_v8 = vpop.trf.xlu1 }
 0xa94   : > { %v1505_v10 = vpop.trf.xlu1 }
 0xa95   : > { %v1520_v11 = vpack.c.bf16 %v1505_v10, %v1504_v8 }
 0xa97   : > { %v1527_v12 = vsel %vm822_vm2, %v1520_v11, 0  ;;  %v1636_v13 = vrot.slane %v1520_v11, 4 }
 0xa98   : > { %2650 = vmatpush3.bf16.msra.mxu1 %v1527_v12  ;;  %v1506_v14 = vpop.trf.xlu1 }
 0xa99   : > { %2661 = vmatprep.subr.bf16.mxu1 %v3203_v9  ;;  %v1641_v16 = vsel %vm822_vm2, %v1636_v13, 0 }
 0xa9b   : > { %2652 = vmatmul.mubr.msk.bf16.vlgmr.msra.gmra.mxu1 %vm818_vm3, %v1487_v4 }
 0xa9c   : > { %2662 = vmatpush3.bf16.msra.mxu1 %v1641_v16  ;;  %2663 = vmatprep.mubr.msk.bf16.mxu1 %vm3204_vm1, %v3203_v9  ;;  %v1507_v18 = vpop.trf.xlu1 }
 0xa9d   : > { %v1521_v19 = vpack.c.bf16 %v1507_v18, %v1506_v14  ;;  %2673 = vmatprep.subr.bf16.mxu1 %v3203_v9 }
 0xa9f   : > { %v1749_v20 = vsel %vm822_vm2, %v1521_v19, 0  ;;  %v1854_v21 = vrot.slane %v1521_v19, 4 }
 0xaa1   : > { %v1859_v22 = vsel %vm822_vm2, %v1854_v21, 0 }
 0xaa3   : > { %2664 = vmatmul.mubr.msk.bf16.vlgmr.msra.gmra.mxu1 %vm818_vm3, %v1634_v7 }
 0xaa4   : > { %2674 = vmatpush3.bf16.msra.mxu1 %v1749_v20  ;;  %2675 = vmatprep.mubr.msk.bf16.mxu1 %vm3204_vm1, %v3203_v9 }
 0xaa5   : > { %2685 = vmatprep.subr.bf16.mxu1 %v3203_v9 }
 0xaab   : > { %2676 = vmatmul.mubr.msk.bf16.vlgmr.msra.gmra.mxu1 %vm818_vm3, %v1744_v23 }
 0xaac   : > { %2686 = vmatpush3.bf16.msra.mxu1 %v1859_v22  ;;  %2687 = vmatprep.mubr.msk.bf16.mxu1 %vm3204_vm1, %v3203_v9 }
 0xaad   : > { %2697 = vmatprep.subr.bf16.mxu1 %v3203_v9 }
 0xab3   : > { %2688 = vmatmul.mubr.msk.bf16.vlgmr.msra.gmra.mxu1 %vm818_vm3, %v1852_v24 }
 0xab4   : > { %2701 = vmatprep.mubr.msk.bf16.mxu1 %vm3204_vm1, %v3203_v9 }
 0xb5b   : > { %v1563_v29 = vpop.f32.mrf.mxu1 }
 0xb5c   : > { %v1564_v32 = vadd.f32 %v1563_v29, %v682_v28 }
 0xb5d   : > { %v2653_v33 = vpop.f32.mrf.mxu1 }
 0xb5e   : > { %v1570_v34 = vsel %vm1569_vm6, %v1564_v32, -inf }
 0xb5f   : > { %1571 = vmax.xlane.f32.xlu0 %v1570_v34  ;;  %v1566_v35 = vpop.f32.mrf.mxu1 }
 0xb61   : > { %v2654_v36 = vpop.f32.mrf.mxu1 }
 0xb63   : > { %v1677_v1 = vpop.f32.mrf.mxu1 }
 0xb64   : > { %v1678_v37 = vadd.f32 %v1677_v1, %v682_v28 }
 0xb65   : > { %v2665_v38 = vpop.f32.mrf.mxu1 }
 0xb66   : > { %v1683_v39 = vsel %vm1569_vm6, %v1678_v37, -inf }
 0xb67   : > { %1684 = vmax.xlane.f32.xlu0 %v1683_v39  ;;  %v1680_v40 = vpop.f32.mrf.mxu1 }
 0xb69   : > { %v2666_v41 = vpop.f32.mrf.mxu1 }
 0xb6b   : > { %v1785_v42 = vpop.f32.mrf.mxu1 }
 0xb6c   : > { %v1786_v43 = vadd.f32 %v1785_v42, %v682_v28 }
 0xb6d   : > { %v2677_v44 = vpop.f32.mrf.mxu1 }
 0xb6e   : > { %v1791_v45 = vsel %vm1569_vm6, %v1786_v43, -inf }
 0xb6f   : > { %1792 = vmax.xlane.f32.xlu0 %v1791_v45  ;;  %v1788_v46 = vpop.f32.mrf.mxu1 }
 0xb70   : > { %v2852_v46 = vld [vmem:[%s3872_s8 + $0x18] sm:$0xff]  }
 0xb71   : > { %v2678_v47 = vpop.f32.mrf.mxu1  ;;  %2698 = vmatpush3.bf16.msra.mxu1 %v2852_v46 }
 0xb72   : > { %2699 = vmatprep.subr.bf16.mxu1 %v3203_v9  ;;  %v2853_v47 = vld [vmem:[%s3872_s8 + $0x10] sm:$0xff]  }
 0xb73   : > { %v1895_v30 = vpop.f32.mrf.mxu1 }
 0xb74   : > { %v1896_v48 = vadd.f32 %v1895_v30, %v682_v28 }
 0xb75   : > { %v2689_v49 = vpop.f32.mrf.mxu1  ;;  %2700 = vmatpush3.bf16.msra.mxu1 %v2853_v47 }
 0xb76   : > { %v1901_v50 = vsel %vm1569_vm6, %v1896_v48, -inf  ;;  %2713 = vmatprep.subr.bf16.mxu1 %v3203_v9 }
 0xb77   : > { %1902 = vmax.xlane.f32.xlu0 %v1901_v50  ;;  %v1898_v51 = vpop.f32.mrf.mxu1 }
 0xb79   : > { %v2690_v52 = vpop.f32.mrf.mxu1 }
 0xb8d   : > { %1583 = vrot.lane.b32.xlu0 %v3671_v63, %s3205_s23  ;;  %s3217_s23 = smov 80  }
 0xb91   : > { %1695 = vrot.lane.b32.xlu0 %v3671_v63, %s3216_s16 }
 0xbe8   : > { %v1572_v53 = vpop.xlane.xlu0 %1571 }
 0xbe9   : > { %v1573_v54 = vsub.f32 %v1564_v32, %v1572_v53 }
 0xbeb   : > { %v1574_v55 = vmul.f32 1.442695, %v1573_v54 }
 0xbed   : > { %2880 = vpow2.f32 %v1574_v55 }
 0xbf0   : > { %v1685_v56 = vpop.xlane.xlu0 %1684 }
 0xbf1   : > { %v1686_v57 = vsub.f32 %v1678_v37, %v1685_v56 }
 0xbf3   : > { %v1687_v58 = vmul.f32 1.442695, %v1686_v57 }
 0xbf5   : > { %2882 = vpow2.f32 %v1687_v58 }
 0xbf8   : > { %v1793_v61 = vpop.xlane.xlu0 %1792 }
 0xbf9   : > { %v1794_v5 = vsub.f32 %v1786_v43, %v1793_v61 }
 0xbfa   : > { %v2881_v59 = vpop.eup %2880 }
 0xbfb   : > { %v1576_v60 = vsel %vm1569_vm6, %v2881_v59, 0.0  ;;  %v1795_v6 = vmul.f32 1.442695, %v1794_v5 }
 0xbfc   : > { %1577 = vadd.xlane.f32.xlu1 %v1576_v60 }
 0xbfd   : > { %2884 = vpow2.f32 %v1795_v6 }
 0xc00   : > { %v1903_v62 = vpop.xlane.xlu0 %1902 }
 0xc01   : > { %v1904_v7 = vsub.f32 %v1896_v48, %v1903_v62  ;;  %v2493_v62 = vld [vmem:[%s3942_s14 + $0x1] ss:$0 sm:$0xff] }
 0xc02   : > { %v2883_v0 = vpop.eup %2882 }
 0xc03   : > { %v1689_v2 = vsel %vm1569_vm6, %v2883_v0, 0.0  ;;  %v1905_v8 = vmul.f32 1.442695, %v1904_v7 }
 0xc04   : > { %1690 = vadd.xlane.f32.xlu0 %v1689_v2  ;;  %v1584_v3 = vpop.permute.xlu0 %1583 }
 0xc05   : > { %v1590_v4 = vsel %vm1588_vm7, %v1584_v3, 0  ;;  %2886 = vpow2.f32 %v1905_v8 }
 0xc06   : > { %2656 = vmatpush3.bf16.msra.mxu0 %v1590_v4 }
 0xc07   : > { %2667 = vmatprep.subr.bf16.mxu0 %v3203_v9 }
 0xc08   : > { %v1696_v16 = vpop.permute.xlu0 %1695 }
 0xc09   : > { %v1701_v22 = vsel %vm1588_vm7, %v1696_v16, 0  ;;  %v2855_v16 = vld [vmem:[#allocation13] sm:$0xff]  }
 0xc0a   : > { %v2885_v10 = vpop.eup %2884 }
 0xc0b   : > { %v1797_v11 = vsel %vm1569_vm6, %v2885_v10, 0.0 }
 0xc12   : > { %v2887_v12 = vpop.eup %2886 }
 0xc13   : > { %v1907_v13 = vsel %vm1569_vm6, %v2887_v12, 0.0 }
 0xc1a   : > { %1803 = vrot.lane.b32.xlu0 %v3671_v63, %s3217_s23 }
 0xc39   : > { %1798 = vadd.xlane.f32.xlu0 %v1797_v11 }
 0xc3d   : > { %1908 = vadd.xlane.f32.xlu0 %v1907_v13 }
 0xc53   : > { %1913 = vrot.lane.b32.xlu0 %v3671_v63, %s3218_s20  ;;  %s3945_s20 = sld [smem:[#allocation35_spill]] }
 0xc59   : > { %s3946_s29 = smov %s3945_s20 }
 0xc85   : > { %v1578_v14 = vpop.xlane.xlu1 %1577 }
 0xc86   : > { %2888 = vrcp.f32 %v1578_v14  ;;  %v2854_v14 = vld [vmem:[#allocation13 + $0x8] sm:$0xff]  }
 0xc8d   : > { %v1691_v18 = vpop.xlane.xlu0 %1690 }
 0xc8e   : > { %2890 = vrcp.f32 %v1691_v18  ;;  %v2857_v18 = vld [vmem:[%s3944_s27 + $0x10] sm:$0xff]  }
 0xc91   : > { %v1804_v24 = vpop.permute.xlu0 %1803 }
 0xc92   : > { %v1809_v26 = vsel %vm1588_vm7, %v1804_v24, 0 }
 0xc93   : > { %v2889_v19 = vpop.eup %2888 }
 0xc94   : > { %v1580_v20 = vmul.f32 %v2889_v19, %v2881_v59 }
 0xc96   : > { %v1581_v21 = vpack.c.bf16 %v1580_v20, %v1580_v20  ;;  %2210 = vst.msk [vmem:[%s3716_s2] sm:$0xff] %vm1569_vm6, %v1580_v20 }
 0xc98   : > { %2658 = vmatmul.mubr.msk.bf16.vlgmr.msra.gmra.mxu0 %vm1569_vm6, %v1581_v21 }
 0xc99   : > { %2668 = vmatpush3.bf16.msra.mxu0 %v1701_v22  ;;  %2669 = vmatprep.mubr.msk.bf16.mxu0 %vm3204_vm1, %v3203_v9  ;;  %v2052_v22 = vsub.s32 4, %v3538_v15 }
 0xc9a   : > { %2679 = vmatprep.subr.bf16.mxu0 %v3203_v9 }
 0xc9b   : > { %v2891_v63 = vpop.eup %2890 }
 0xc9c   : > { %v1693_v23 = vmul.f32 %v2891_v63, %v2883_v0  ;;  %v2057_v63 = vsub.s32 5, %v3538_v15  ;;  %v2859_v15 = vld [vmem:[%s3944_s27] sm:$0xff]  }
 0xc9e   : > { %v1694_v25 = vpack.c.bf16 %v1693_v23, %v1693_v23  ;;  %v2053_v23 = vrot.slane %v3544_v17, %v2052_v22 }
 0xca0   : > { %2670 = vmatmul.mubr.msk.bf16.vlgmr.msra.gmra.mxu0 %vm1569_vm6, %v1694_v25 }
 0xca1   : > { %2680 = vmatpush3.bf16.msra.mxu0 %v1809_v26  ;;  %2681 = vmatprep.mubr.msk.bf16.mxu0 %vm3204_vm1, %v3203_v9  ;;  %v2058_v26 = vrot.slane %v3544_v17, %v2057_v63  ;;  %v2497_v17 = vld [vmem:[%s3945_s20] ss:$0 sm:$0xff] }
 0xca2   : > { %2691 = vmatprep.subr.bf16.mxu0 %v3203_v9 }
 0xcc2   : > { %v1799_v27 = vpop.xlane.xlu0 %1798 }
 0xcc3   : > { %2892 = vrcp.f32 %v1799_v27 }
 0xcc6   : > { %v1909_v28 = vpop.xlane.xlu0 %1908 }
 0xcc7   : > { %2894 = vrcp.f32 %v1909_v28 }
 0xcca   : > { %v1914_v33 = vpop.permute.xlu0 %1913 }
 0xccb   : > { %v1919_v36 = vsel %vm1588_vm7, %v1914_v33, 0 }
 0xcd0   : > { %v2893_v29 = vpop.eup %2892 }
 0xcd1   : > { %v1801_v32 = vmul.f32 %v2893_v29, %v2885_v10 }
 0xcd3   : > { %v1802_v34 = vpack.c.bf16 %v1801_v32, %v1801_v32  ;;  %v2858_v32 = vld [vmem:[%s3944_s27 + $0x8] sm:$0xff]  }
 0xcd4   : > { %v2895_v35 = vpop.eup %2894 }
 0xcd5   : > { %2682 = vmatmul.mubr.msk.bf16.vlgmr.msra.gmra.mxu0 %vm1569_vm6, %v1802_v34  ;;  %v1911_v1 = vmul.f32 %v2895_v35, %v2887_v12 }
 0xcd6   : > { %2692 = vmatpush3.bf16.msra.mxu0 %v1919_v36  ;;  %2693 = vmatprep.mubr.msk.bf16.mxu0 %vm3204_vm1, %v3203_v9 }
 0xcd7   : > { %2705 = vmatprep.subr.bf16.mxu0 %v3203_v9  ;;  %v1912_v37 = vpack.c.bf16 %v1911_v1, %v1911_v1 }
 0xcdd   : > { %2694 = vmatmul.mubr.msk.bf16.vlgmr.msra.gmra.mxu0 %vm1569_vm6, %v1912_v37 }
 0xcde   : > { %2709 = vmatprep.mubr.msk.bf16.mxu0 %vm3204_vm1, %v3203_v9  ;;  %2706 = vmatpush3.bf16.msra.mxu0 %v2854_v14 }
 0xcdf   : > { %2707 = vmatprep.subr.bf16.mxu0 %v3203_v9 }
 0xce2   : > { %2708 = vmatpush3.bf16.msra.mxu0 %v2855_v16 }
 0xd58   : > { %v1626_v38 = vpop.f32.mrf.mxu0 }
 0xd5a   : > { %v2659_v39 = vpop.f32.mrf.mxu0 }
 0xd5c   : > { %v1629_v40 = vpop.f32.mrf.mxu0 }
 0xd5e   : > { %v2660_v41 = vpop.f32.mrf.mxu0 }
 0xd60   : > { %v1737_v42 = vpop.f32.mrf.mxu0 }
 0xd61   : > { %1962 = vrot.lane.b32.xlu1 %v1737_v42, %s3213_s30 }
 0xd62   : > { %v2671_v43 = vpop.f32.mrf.mxu0 }
 0xd64   : > { %v1740_v44 = vpop.f32.mrf.mxu0 }
 0xd66   : > { %v2672_v45 = vpop.f32.mrf.mxu0 }
 0xd95   : > { %v1845_v30 = vpop.f32.mrf.mxu0 }
 0xd96   : > { %1966 = vrot.lane.b32.xlu0 %v1845_v30, %s3214_s26  ;;  %s3948_s26 = sld [smem:[#allocation38_spill]] }
 0xd97   : > { %v2683_v48 = vpop.f32.mrf.mxu0 }
 0xd99   : > { %v1848_v49 = vpop.f32.mrf.mxu0 }
 0xd9b   : > { %v2684_v50 = vpop.f32.mrf.mxu0 }
 0xd9d   : > { %v1955_v51 = vpop.f32.mrf.mxu0 }
 0xd9e   : > { %1970 = vrot.lane.b32.xlu0 %v1955_v51, %s3215_s22  ;;  %s2241_s22 = scalar_lea.hbm %s3948_s26, %s2509_s9 }
 0xd9f   : > { %v2695_v52 = vpop.f32.mrf.mxu0 }
 0xda1   : > { %v1958_v53 = vpop.f32.mrf.mxu0 }
 0xda3   : > { %v2696_v54 = vpop.f32.mrf.mxu0 }
 0xdd3   : > { %v1963_v55 = vpop.permute.xlu1 %1962 }
 0xdd4   : > { %v1973_v57 = vsel %vm818_vm3, %v1626_v38, %v1963_v55 }
 0xe08   : > { %v1967_v56 = vpop.permute.xlu0 %1966 }
 0xe09   : > { %v1974_v58 = vsel %vm1268_vm4, %v1973_v57, %v1967_v56 }
 0xe10   : > { %v1971_v59 = vpop.permute.xlu0 %1970 }
 0xe11   : > { %v1975_v60 = vsel %vm1270_vm5, %v1974_v58, %v1971_v59 }
 0xe12   : > { %v1976_v61 = vpack.c.bf16 %v1975_v60, %v1975_v60 }
 0xe14   : > { %2702 = vmatmul.mubr.msk.bf16.vlgmr.msra.gmra.mxu1 %vm684_vm0, %v1976_v61 }
 0xe15   : > { %2721 = vmatprep.mubr.msk.bf16.mxu1 %vm3204_vm1, %v3203_v9 }
 0xed4   : > { %v2030_v0 = vpop.f32.mrf.mxu1 }
 0xed5   : > { %v2031_v2 = vadd.f32 %v2493_v62, %v2030_v0 }
 0xed6   : > { %v2703_v3 = vpop.f32.mrf.mxu1 }
 0xed7   : > { %v3759_v4 = vadd.f32 %v2031_v2, %v3637_v31  ;;  %v2856_v31 = vld [vmem:[%s3944_s27 + $0x18] sm:$0xff]  }
 0xed8   : > { %v2033_v5 = vpop.f32.mrf.mxu1  ;;  %2714 = vmatpush3.bf16.msra.mxu1 %v2856_v31 }
 0xed9   : > { %v2037_v6 = vsel %vm684_vm0, %v3759_v4, 0.0  ;;  %2715 = vmatprep.subr.bf16.mxu1 %v3203_v9 }
 0xeda   : > { %2038 = vadd.xlane.f32.xlu0 %v2037_v6  ;;  %v2704_v7 = vpop.f32.mrf.mxu1 }
 0xedc   : > { %2716 = vmatpush3.bf16.msra.mxu1 %v2857_v18 }
 0xedd   : > { %2717 = vmatprep.subr.bf16.mxu1 %v3203_v9 }
 0xee0   : > { %2718 = vmatpush3.bf16.msra.mxu1 %v2858_v32 }
 0xee1   : > { %2719 = vmatprep.subr.bf16.mxu1 %v3203_v9 }
 0xee4   : > { %2720 = vmatpush3.bf16.msra.mxu1 %v2859_v15 }
 0xf63   : > { %v2039_v8 = vpop.xlane.xlu0 %2038 }
 0xf64   : > { %v2040_v10 = vmul.f32 0.03125, %v2039_v8 }
 0xf66   : > { %v2041_v11 = vsub.f32 %v3759_v4, %v2040_v10 }
 0xf68   : > { %v2042_v12 = vmul.f32 %v2041_v11, %v2041_v11 }
 0xf6a   : > { %v2043_v13 = vsel %vm684_vm0, %v2042_v12, 0.0 }
 0xf6b   : > { %2044 = vadd.xlane.f32.xlu1 %v2043_v13 }
 0xff4   : > { %v2045_v19 = vpop.xlane.xlu1 %2044 }
 0xff5   : > { %v2046_v20 = vmul.f32 0.03125, %v2045_v19 }
 0xff7   : > { %v2047_v21 = vadd.f32 1e-06, %v2046_v20 }
 0xff9   : > { %2896 = vrsqrt.f32 %v2047_v21 }
0x1006   : > { %v2897_v24 = vpop.eup %2896 }
0x1007   : > { %v2049_v25 = vmul.f32 %v2897_v24, %v2041_v11 }
0x1009   : > { %v2054_v27 = vmul.f32 %v2053_v23, %v2049_v25 }
0x100b   : > { %v2059_v28 = vadd.f32 %v2058_v26, %v2054_v27 }
0x100d   : > { %v2060_v29 = vpack.c.bf16 %v2059_v28, %v2059_v28 }
0x100f   : > { %2710 = vmatmul.mubr.msk.bf16.vlgmr.msra.gmra.mxu0 %vm684_vm0, %v2060_v29 }
0x10cf   : > { %v2119_v33 = vpop.f32.mrf.mxu0 }
0x10d0   : > { %v2120_v34 = vadd.f32 %v2497_v17, %v2119_v33 }
0x10d1   : > { %v2711_v35 = vpop.f32.mrf.mxu0 }
0x10d2   : > { %v2125_v36 = vmax.f32 %v2120_v34, 0.0 }
0x10d3   : > { %v2122_v1 = vpop.f32.mrf.mxu0 }
0x10d4   : > { %v2126_v37 = vpack.c.bf16 %v2125_v36, %v2125_v36 }
0x10d5   : > { %v2712_v38 = vpop.f32.mrf.mxu0 }
0x10d6   : > { %2722 = vmatmul.mubr.msk.bf16.vlgmr.msra.gmra.mxu1 %vm2164_vm8, %v2126_v37 }
0x10d7   : > { %3099 = shalt.err (!%p3096_p6)
}
0x10d8   : > { %s3100_s25 = scalar_lea.hbm %s2241_s22, 128  ;;  %s3104_s23 = scalar_lea.hbm %s3948_s26, 256 }
0x10d9   : > { %p3101_p4 = scmp.ne.s32.totalorder %s2241_s22, %s3100_s25  ;;  %p3105_p2 = scmp.lt.s32.totalorder %s2241_s22, %s3948_s26 }
0x10da   : > { %p3106_p5 = scmp.lt.s32.totalorder %s3104_s23, %s3100_s25 }
0x10db   : > { %p3102_p8 = pnand %p3101_p4, %p3949_p7 }
0x10dc   : > { %p3107_p3 = por %p3106_p5, %p3105_p2 }
0x10dd   : > { %p3103_p0 = pneg %p3102_p8 }
0x10df   : > { %p3108_p10 = pnand %p3107_p3, %p3103_p0 }
0x10e1   : > { %3111 = shalt.err (!%p3108_p10)
}
0x10e2   : > { %2748 = dma.vmem_to_hbm [thread:$0]  (%p3949_p7), %s2244_s3, 128, %s2241_s22, %s2217_s1   ;;  %v2501_v9 = vld [vmem:[%s3946_s29 + $0x1] ss:$0 sm:$0xff] }
0x10e3   : > { %s645_s12 = scalar_lea.vmem [#allocation14], %s2449_s7  ;;  %s3950_s2 = sld [smem:[#allocation37_spill]] }
0x10e4   : > { %s2230_s13 = sshll.u32 %s645_s12, 4  ;;  %s2212_s7 = scalar_lea.sflag [#allocation4], %s3495_s17  ;;  %s3822_s13 = int_to_ptr.vmem [resolvable:$true] %s2230_s13 }
0x10e5   : > { %s3112_s22 = scalar_lea.vmem %s3822_s13, 128  ;;  %s3220_s24 = smov [#allocation14]  }
0x10e6   : > { %p3113_p11 = scmp.ne.s32.totalorder %s3822_s13, %s3112_s22  ;;  %s3116_s3 = sshll.u32 %s3220_s24, 4  ;;  %s3117_s3 = int_to_ptr.vmem [resolvable:$false] %s3116_s3 }
0x10e7   : > { %p3119_p13 = scmp.lt.s32.totalorder %s3822_s13, %s3117_s3 }
0x10e8   : > { %p3114_p12 = pnand %p3113_p11, %p3949_p7 }
0x10e9   : > { %s3820_s16 = scalar_lea.hbm %s3950_s2, %s2509_s9  ;;  %s3118_s9 = scalar_lea.vmem %s3117_s3, 256 }
0x10ea   : > { %p3115_p1 = pneg %p3114_p12  ;;  %p3120_p9 = scmp.lt.s32.totalorder %s3118_s9, %s3112_s22 }
0x10ec   : > { %p3121_p6 = por %p3120_p9, %p3119_p13 }
0x10ee   : > { %p3122_p4 = pnand %p3121_p6, %p3115_p1 }
0x1196   : > { %v2202_v39 = vpop.f32.mrf.mxu1 }
0x1197   : > { %v2203_v40 = vadd.f32 %v2501_v9, %v2202_v39 }
0x1198   : > { %v2723_v41 = vpop.f32.mrf.mxu1 }
0x1199   : > { %v2208_v42 = vadd.f32 %v2203_v40, %v3759_v4 }
0x119a   : > { %v2205_v43 = vpop.f32.mrf.mxu1 }
0x119b   : > { %2209 = vst.msk [vmem:[%s645_s12] sm:$0xff] %vm684_vm0, %v2208_v42 }
0x119c   : > { %v2724_v44 = vpop.f32.mrf.mxu1 }
0x119d   : > { %3125 = shalt.err (!%p3122_p4)
}
0x119e   : > { %s3126_s1 = scalar_lea.hbm %s3820_s16, 128  ;;  %s3130_s20 = scalar_lea.hbm %s3950_s2, 256 }
0x119f   : > { %p3127_p8 = scmp.ne.s32.totalorder %s3820_s16, %s3126_s1  ;;  %p3131_p5 = scmp.lt.s32.totalorder %s3820_s16, %s3950_s2 }
0x11a0   : > { %p3132_p3 = scmp.lt.s32.totalorder %s3130_s20, %s3126_s1 }
0x11a1   : > { %p3128_p0 = pnand %p3127_p8, %p3949_p7 }
0x11a2   : > { %p3133_p10 = por %p3132_p3, %p3131_p5 }
0x11a3   : > { %p3129_p2 = pneg %p3128_p0 }
0x11a5   : > { %p3134_p11 = pnand %p3133_p10, %p3129_p2 }
0x11a7   : > { %3137 = shalt.err (!%p3134_p11)
}
0x11a8   : > { %2747 = dma.vmem_to_hbm [thread:$0]  (%p3949_p7), %s3822_s13, 128, %s3820_s16, %s2212_s7  }
0x11a9 PF: > { %s3951_s18 = sld [smem:[#allocation23_spill]]  ;;  %p3954_p1 = scmp.ge.s32.totalorder %s3192_s21, 2 }
0x11aa   : > { %s3952_s12 = sld [smem:[#allocation28_spill]] }
0x11af   : > { %s2255_s15 = sand.u32 1, %s3951_s18  }
0x11b0   : > { %p3953_p12 = scmp.ne.s32.totalorder %s3952_s12, 0  ;;  %s2256_s25 = scalar_lea.sflag [#allocation4], %s2255_s15 }
0x11b2   : > { %p2775_p13 = pnand %p3954_p1, %p3953_p12 }
0x11b4   : > { %p2776_p9 = pneg %p2775_p13 }
0x11b6   : > { %3171 = dma.done.wait (%p2776_p9), %s2256_s25, 128  }
0x11b7   : > { %3173 = vsyncadd (%p2776_p9), %s2256_s25, 4294967168  ;;  %s2265_s22 = scalar_lea.sflag [#allocation16], %s2255_s15 }
0x11b8   : > { %3175 = dma.done.wait (%p2776_p9), %s2265_s22, 128  }
0x11b9   : > { %3177 = vsyncadd (%p2776_p9), %s2265_s22, 4294967168  ;;  %s3955_s21 = sld [smem:[#allocation25_spill]]  ;;  %s3958_s18 = smov %s3184_s19 }
0x11ba   : > { %s3956_s4 = sld [smem:[#allocation24_spill]] }
0x11bb   : > { %s3957_s20 = sld [smem:[#allocation26_spill]] }
0x11bf   : > { %p37_p7 = scmp.ge.s32.totalorder %s3955_s21, 4  }
0x11c0   : > { %s3959_s19 = smov %s3956_s4 }
0x11c1   :  { %39 = sbr.rel (!%p37_p7) target bundleno = 22 (0x16), region = 183 }
0x11c6   :  { %2270 = vsyncpa [#allocation3], 1 }
0x11c7   :  { %2272 = vsyncpa [#allocation3 + $0x1], 1 }
0x11c8   :  { %2273 = vsyncpa [#allocation6], 1 }
0x11c9   :  { %2274 = vsyncpa [#allocation9], 1 }
0x11ca   :  { %2276 = vsyncpa [#allocation9 + $0x1], 1 }
0x11cb   :  { %2277 = vsyncpa [#allocation12], 1 }
0x11cc   :  { %2278 = vsyncpa [#allocation4], 1 }
0x11cd   :  { %2280 = vsyncpa [#allocation4 + $0x1], 1 }
0x11ce   :  { %2281 = vsyncpa [#allocation16], 1 }
0x11cf   :  { %2283 = vsyncpa [#allocation16 + $0x1], 1 }

</bundles_post_ra>
